<compile_context>
chip_gen: v7x
topology: tpu7x:2x2x1
jax: 0.10.0
libtpu: 0.0.40
codegen_flags: <defaults>
</compile_context>

<pallas_src>
import jax
import jax.numpy as jnp
import numpy as np
from jax.experimental import pallas as pl
from jax.experimental.pallas import tpu as pltpu

N_SEP = 3  # dim=3 SeparableConv2d blocks inside SeparableConvBlock
_TAPS = [(dy, dx) for dy in (-1, 0, 1) for dx in (-1, 0, 1)]


# ----------------------------------------------------------------------------
# helpers
# ----------------------------------------------------------------------------
def _round_up(v, m):
    return (v + m - 1) // m * m


def _pick_images_per_block(n_images, hw, target_lanes=512, max_lanes=8192):
    """Whole images folded into the lane axis of one grid step.

    Preference order: >= 2 grid steps (v7x megacore), lane count within
    [target_lanes, max_lanes] (amortize per-step overhead without blowing
    VMEM), lane count a multiple of 128 (unmasked, lane-dense stores)."""
    valid = [i for i in range(1, n_images + 1)
             if n_images % i == 0 and ((i * hw) % 128 == 0 or i == n_images)]
    multi = [i for i in valid if n_images // i >= 2] or valid
    good = [i for i in multi if target_lanes <= i * hw <= max_lanes]
    if good:
        return min(good)
    under = [i for i in multi if i * hw <= max_lanes]
    return max(under) if under else min(multi)


def _tap_masks(ho, wo, ipb):
    """(9, ipb*ho*wo) f32 masks: tap (dy, dx) is valid where the 3x3 stencil
    stays inside its own image (zero-padding depthwise conv).  Also kills the
    circular wrap / cross-image leakage introduced by the lane rotations."""
    hw = ho * wo
    p = np.arange(ipb * hw) % hw
    hh, ww = p // wo, p % wo
    masks = np.empty((9, ipb * hw), np.float32)
    for t, (dy, dx) in enumerate(_TAPS):
        ok = np.ones(ipb * hw, bool)
        if dy < 0:
            ok &= hh >= 1
        if dy > 0:
            ok &= hh <= ho - 2
        if dx < 0:
            ok &= ww >= 1
        if dx > 0:
            ok &= ww <= wo - 2
        masks[t] = ok
    # TODO(synk): generate these in-kernel from broadcasted_iota to drop the
    # (small, DMA'd-once) mask input entirely.
    return jnp.asarray(masks)


def _fuse_weights(p, n_sep, C):
    """Fold depthwise 3x3 weights into the pointwise 1x1 matmul.

    Returns
      M  : (n_sep, C, 9*C)  M[s, d, t*C + c] = pww[s, d, c] * dww[c, s*9 + t]
      b  : (C, n_sep)       b[d, s] = (pww[s] @ dwb[:, s])[d] + pwb[d, s]
      fw : (cout, C), fb : (cout, 1)
    Channels are zero-padded up to C (multiple of 8) so the in-kernel tap
    stack concatenates at sublane-aligned offsets; padded rows/cols are zero,
    so padded channels stay exactly zero through every stage."""
    cin = p["pww"].shape[-1]
    pad = C - cin
    pww = jnp.pad(p["pww"], ((0, 0), (0, pad), (0, pad)))
    dww = jnp.pad(p["dww"], ((0, pad), (0, 0)))
    dwb = jnp.pad(p["dwb"], ((0, pad), (0, 0)))
    pwb = jnp.pad(p["pwb"], ((0, pad), (0, 0)))
    fw = jnp.pad(p["fw"], ((0, 0), (0, pad)))
    dwt = dww.reshape(C, n_sep, 9).transpose(1, 2, 0)              # (s, t, c)
    M = (pww[:, :, None, :] * dwt[:, None, :, :]).reshape(n_sep, C, 9 * C)
    b = jnp.einsum("sdc,cs->ds", pww, dwb) + pwb
    return M, b, fw, p["fb"]


# ----------------------------------------------------------------------------
# Pallas kernel: SeparableConvBlock (3 x SeparableConv2d + final 1x1 conv) for
# one block of whole images, activations channel-major (C, L), L = ipb*Ho*Wo.
# ----------------------------------------------------------------------------
def make_block_kernel(wo, L, n_sep, mxu_dtype):
    shifts = [dy * wo + dx for dy, dx in _TAPS]

    def kernel(x_ref, mask_ref, m_ref, b_ref, fw_ref, fb_ref, o_ref):
        cur = x_ref[...]                               # (C, L) f32
        masks = mask_ref[...]                          # (9, L) f32 border masks
        mrow = [masks[t:t + 1, :] for t in range(9)]   # hoisted (1, L) rows
        bias = b_ref[...]                              # (C, n_sep) f32

        for s in range(n_sep):
            # Stencil taps via XLU lane rotations (vreg resident, no halo VMEM
            # buffer, no unaligned loads).  pltpu.roll matches jnp.roll
            # (result[l] = x[l - shift]), so shift = (-d) % L gives the value
            # at flat offset l + d; invalid / wrapped lanes are masked to 0.
            taps = []
            for t, d in enumerate(shifts):
                if d == 0:
                    taps.append(cur)                   # centre tap, always valid
                else:
                    taps.append(pltpu.roll(cur, shift=(-d) % L, axis=1) * mrow[t])
            # Depthwise 3x3 + pointwise 1x1 fused into one MXU matmul with
            # contraction dim 9*C (weights folded host-side into m_ref).
            stacked = jnp.concatenate(taps, axis=0).astype(mxu_dtype)  # (9C, L)
            y = jnp.dot(m_ref[s], stacked, preferred_element_type=jnp.float32)
            cur = jnp.maximum(y + bias[:, s:s + 1], 0.0)
            # Dropout: identity (inference / dp_rate defaults to 0).

        # Final Conv2d(Cin, Cout, kernel_size=1) on the MXU.
        out = jnp.dot(fw_ref[...], cur.astype(mxu_dtype),
                      preferred_element_type=jnp.float32)
        o_ref[...] = out + fb_ref[...]

    return kernel


# ----------------------------------------------------------------------------
# Wrapper: one SeparableConvBlock on channel-major input.
# ----------------------------------------------------------------------------
def separable_conv_block_cm(x_cm, p, n_sep=N_SEP, mxu_dtype=jnp.bfloat16):
    """(Cin, N, Ho, Wo) float32 -> (Cout, N, Ho, Wo) float32."""
    cin, n, ho, wo = x_cm.shape
    hw = ho * wo
    cout = p["fw"].shape[0]
    C = max(8, _round_up(cin, 8))        # sublane-aligned tap stacking

    ipb = _pick_images_per_block(n, hw)  # whole images per grid step
    grid = (n // ipb,)
    L = ipb * hw

    x2 = x_cm.reshape(cin, n * hw)       # free reshape -> lane-dense columns
    if C != cin:
        x2 = jnp.pad(x2, ((0, C - cin), (0, 0)))   # zero weights keep pads inert

    masks = _tap_masks(ho, wo, ipb)      # (9, L) f32, grid-invariant
    M, b, fw, fb = _fuse_weights(p, n_sep, C)
    Mq, fwq = M.astype(mxu_dtype), fw.astype(mxu_dtype)

    def inv(arr):                        # grid-invariant operand (DMA'd once)
        nd = arr.ndim
        return pl.BlockSpec(arr.shape, lambda g, _nd=nd: (0,) * _nd)

    out = pl.pallas_call(
        make_block_kernel(wo, L, n_sep, mxu_dtype),
        out_shape=jax.ShapeDtypeStruct((cout, n * hw), jnp.float32),
        grid_spec=pltpu.PrefetchScalarGridSpec(
            num_scalar_prefetch=0,
            grid=grid,
            in_specs=[pl.BlockSpec((C, L), lambda g: (0, g)),
                      inv(masks), inv(Mq), inv(b), inv(fwq), inv(fb)],
            out_specs=pl.BlockSpec((cout, L), lambda g: (0, g)),
        ),
        compiler_params=pltpu.CompilerParams(
            dimension_semantics=("parallel",),        # independent image blocks
            vmem_limit_bytes=48 * 1024 * 1024),       # within v7x's 64 MiB/TC
    )(x2, masks, Mq, b, fwq, fb)

    # TODO(synk): for production resolutions add a spatial row-tile grid axis
    # (1-row halo), fuse the 2x2 maxpool + adjacent SeparableDown layers so
    # intermediates stay in VMEM, and optionally store inter-layer activations
    # as bf16 to halve HBM traffic (re-validate numerics).
    return out.reshape(cout, n, ho, wo)


# ----------------------------------------------------------------------------
# Encoder (public API: NCHW, like the PyTorch module).
# ----------------------------------------------------------------------------
def separable_encoder(x, layer_params, n_sep=N_SEP, mxu_dtype=jnp.bfloat16):
    """x: (N, C, H, W) float32.  Returns (out, skips), both NCHW."""
    n, c, h, w = x.shape
    # Layer 0 MaxPool2d(2) on the NCHW input; only the 1/4-size pooled result
    # is moved into the channel-major internal layout.
    pooled = x.reshape(n, c, h // 2, 2, w // 2, 2).max(axis=(3, 5))
    act = jnp.transpose(pooled, (1, 0, 2, 3))          # (C, N, Ho, Wo)

    skips_cm = []
    for i, p in enumerate(layer_params):
        if i > 0:
            # MaxPool2d(2) of SeparableDown layer i (channel-major view).
            cc, nn, hh, ww = act.shape
            act = act.reshape(cc, nn, hh // 2, 2, ww // 2, 2).max(axis=(3, 5))
        act = separable_conv_block_cm(act, p, n_sep, mxu_dtype)
        if i != len(layer_params) - 1:
            skips_cm.append(act)

    out = jnp.transpose(act, (1, 0, 2, 3))             # back to NCHW
    skips = [jnp.transpose(s, (1, 0, 2, 3)) for s in skips_cm]
    return out, skips


# ----------------------------------------------------------------------------
# Deterministic parameter initialization (synthetic weights).
# ----------------------------------------------------------------------------
def init_params(dims, key, n_sep=N_SEP):
    params = []
    for i in range(len(dims) - 1):
        cin, cout = dims[i], dims[i + 1]
        key, k0, k1, k2, k3, k4, k5 = jax.random.split(key, 7)
        params.append(dict(
            # depthwise 3x3: row = channel, column = s*9 + ky*3 + kx
            dww=jax.random.normal(k0, (cin, n_sep * 9), jnp.float32) * 0.2,
            dwb=jax.random.normal(k1, (cin, n_sep), jnp.float32) * 0.1,
            # pointwise 1x1, oriented (out, in): y = pww[s] @ act
            pww=jax.random.normal(k2, (n_sep, cin, cin), jnp.float32)
                * (1.0 / np.sqrt(cin)),
            pwb=jax.random.normal(k3, (cin, n_sep), jnp.float32) * 0.1,
            # final 1x1 conv, oriented (out, in)
            fw=jax.random.normal(k4, (cout, cin), jnp.float32)
                * (1.0 / np.sqrt(cin)),
            fb=jax.random.normal(k5, (cout, 1), jnp.float32) * 0.1,
        ))
    return params


# ----------------------------------------------------------------------------
# Pure-JAX mirror of the kernel algorithm (same weight fusion, same bf16 MXU
# operand rounding, f32 accumulation) -- tight-tolerance check target.
# ----------------------------------------------------------------------------
def _mirror_block_cm(x_cm, p, n_sep=N_SEP, mxu_dtype=jnp.bfloat16):
    cin, n, ho, wo = x_cm.shape
    hw = ho * wo
    M, b, fw, fb = _fuse_weights(p, n_sep, cin)
    Mq = M.astype(mxu_dtype).astype(jnp.float32)
    fwq = fw.astype(mxu_dtype).astype(jnp.float32)
    masks = _tap_masks(ho, wo, n)
    shifts = [dy * wo + dx for dy, dx in _TAPS]
    cur = x_cm.reshape(cin, n * hw)
    for s in range(n_sep):
        taps = []
        for t, d in enumerate(shifts):
            if d == 0:
                taps.append(cur)
            else:
                taps.append(jnp.roll(cur, -d, axis=1) * masks[t:t + 1, :])
        stacked = jnp.concatenate(taps, 0).astype(mxu_dtype).astype(jnp.float32)
        cur = jnp.maximum(Mq[s] @ stacked + b[:, s:s + 1], 0.0)
    out = fwq @ cur.astype(mxu_dtype).astype(jnp.float32) + fb
    return out.reshape(fw.shape[0], n, ho, wo)


def mirror_encoder(x, layer_params, n_sep=N_SEP, mxu_dtype=jnp.bfloat16):
    n, c, h, w = x.shape
    act = jnp.transpose(
        x.reshape(n, c, h // 2, 2, w // 2, 2).max(axis=(3, 5)), (1, 0, 2, 3))
    skips = []
    for i, p in enumerate(layer_params):
        if i > 0:
            cc, nn, hh, ww = act.shape
            act = act.reshape(cc, nn, hh // 2, 2, ww // 2, 2).max(axis=(3, 5))
        act = _mirror_block_cm(act, p, n_sep, mxu_dtype)
        if i != len(layer_params) - 1:
            skips.append(act)
    return (jnp.transpose(act, (1, 0, 2, 3)),
            [jnp.transpose(s, (1, 0, 2, 3)) for s in skips])


# ----------------------------------------------------------------------------
# Pure-JAX reference with the original module semantics (plain f32 convs).
# ----------------------------------------------------------------------------
def ref_down(x, p, n_sep=N_SEP):
    n, c, h, w = x.shape
    cur = x.reshape(n, c, h // 2, 2, w // 2, 2).max(axis=(3, 5))
    for s in range(n_sep):
        dw = jnp.transpose(p["dww"][:, s * 9:(s + 1) * 9]).reshape(3, 3, 1, c)
        y = jax.lax.conv_general_dilated(
            cur, dw, window_strides=(1, 1), padding="SAME",
            dimension_numbers=("NCHW", "HWIO", "NCHW"),
            feature_group_count=c)
        y = y + p["dwb"][:, s][None, :, None, None]
        y = (jnp.einsum("dc,nchw->ndhw", p["pww"][s], y)
             + p["pwb"][:, s][None, :, None, None])
        cur = jax.nn.relu(y)
    return (jnp.einsum("dc,nchw->ndhw", p["fw"], cur)
            + p["fb"][:, 0][None, :, None, None])


def ref_encoder(x, layer_params, n_sep=N_SEP):
    skips = []
    for i, p in enumerate(layer_params):
        x = ref_down(x, p, n_sep)
        if i != len(layer_params) - 1:
            skips.append(x)
    return x, skips


# ----------------------------------------------------------------------------
if __name__ == "__main__":
    key = jax.random.PRNGKey(0)
    dims = [4, 8, 16]            # SeparableEncoder(dims) -> 2 SeparableDown layers
    N, H, W = 2, 32, 32

    k_x, k_p = jax.random.split(key)
    x = jax.random.normal(k_x, (N, dims[0], H, W), jnp.float32)   # NCHW
    params = init_params(dims, k_p)

    run = jax.jit(separable_encoder)
    out, skips = run(x, params)
    jax.block_until_ready((out, skips))

    # Shape checks (NCHW).
    assert out.shape == (N, dims[-1], H // 4, W // 4)
    assert len(skips) == len(dims) - 2
    assert skips[0].shape == (N, dims[1], H // 2, W // 2)

    # (a) Tight check vs the pure-JAX mirror of the kernel algorithm (same
    #     fused weights + bf16 MXU operand rounding, f32 accumulation).
    mir_o, mir_s = mirror_encoder(x, params)
    np.testing.assert_allclose(np.asarray(out), np.asarray(mir_o),
                               rtol=1e-2, atol=1e-2)
    for got, want in zip(skips, mir_s):
        np.testing.assert_allclose(np.asarray(got), np.asarray(want),
                                   rtol=1e-2, atol=1e-2)

    # (b) Semantic check vs the plain-f32 conv reference (original module
    #     math); tolerance absorbs bf16 MXU operand rounding.
    ref_o, ref_s = ref_encoder(x, params)
    np.testing.assert_allclose(np.asarray(out), np.asarray(ref_o),
                               rtol=5e-2, atol=5e-2)
    for got, want in zip(skips, ref_s):
        np.testing.assert_allclose(np.asarray(got), np.asarray(want),
                                   rtol=5e-2, atol=5e-2)

    print("KERNEL_OK")
</pallas_src>

<mosaic_0001>
module attributes {stable_mosaic.version = 11 : i64} {
  func.func @kernel(%arg0: i32, %arg1: memref<8x256xf32, #tpu.memory_space<vmem>>, %arg2: memref<9x256xf32, #tpu.memory_space<vmem>>, %arg3: memref<3x8x72xbf16, #tpu.memory_space<vmem>>, %arg4: memref<8x3xf32, #tpu.memory_space<vmem>>, %arg5: memref<8x8xbf16, #tpu.memory_space<vmem>>, %arg6: memref<8x1xf32, #tpu.memory_space<vmem>>, %arg7: memref<8x256xf32, #tpu.memory_space<vmem>>) attributes {dimension_semantics = [#tpu.dimension_semantics<parallel>], iteration_bounds = array<i64: 2>, scalar_prefetch = 0 : i64, scratch_operands = 0 : i64, tpu.core_type = #tpu.core_type<tc>, window_params = [{transform_indices = @transform_0, window_bounds = array<i64: 8, 256>}, {pipeline_mode = #tpu.pipeline_mode<synchronous>, transform_indices = @transform_1, window_bounds = array<i64: 9, 256>}, {pipeline_mode = #tpu.pipeline_mode<synchronous>, transform_indices = @transform_2, window_bounds = array<i64: 3, 8, 72>}, {pipeline_mode = #tpu.pipeline_mode<synchronous>, transform_indices = @transform_3, window_bounds = array<i64: 8, 3>}, {pipeline_mode = #tpu.pipeline_mode<synchronous>, transform_indices = @transform_4, window_bounds = array<i64: 8, 8>}, {pipeline_mode = #tpu.pipeline_mode<synchronous>, transform_indices = @transform_5, window_bounds = array<i64: 8, 1>}, {transform_indices = @transform_6, window_bounds = array<i64: 8, 256>}]} {
    %c0 = arith.constant 0 : index
    %c0_0 = arith.constant 0 : index
    %0 = vector.load %arg1[%c0, %c0_0] : memref<8x256xf32, #tpu.memory_space<vmem>>, vector<8x256xf32>
    %c0_1 = arith.constant 0 : index
    %c0_2 = arith.constant 0 : index
    %1 = vector.load %arg2[%c0_1, %c0_2] : memref<9x256xf32, #tpu.memory_space<vmem>>, vector<9x256xf32>
    %2 = vector.extract_strided_slice %1 {offsets = [0, 0], sizes = [1, 256], strides = [1, 1]} : vector<9x256xf32> to vector<1x256xf32>
    %3 = vector.extract_strided_slice %1 {offsets = [1, 0], sizes = [1, 256], strides = [1, 1]} : vector<9x256xf32> to vector<1x256xf32>
    %4 = vector.extract_strided_slice %1 {offsets = [2, 0], sizes = [1, 256], strides = [1, 1]} : vector<9x256xf32> to vector<1x256xf32>
    %5 = vector.extract_strided_slice %1 {offsets = [3, 0], sizes = [1, 256], strides = [1, 1]} : vector<9x256xf32> to vector<1x256xf32>
    %6 = vector.extract_strided_slice %1 {offsets = [5, 0], sizes = [1, 256], strides = [1, 1]} : vector<9x256xf32> to vector<1x256xf32>
    %7 = vector.extract_strided_slice %1 {offsets = [6, 0], sizes = [1, 256], strides = [1, 1]} : vector<9x256xf32> to vector<1x256xf32>
    %8 = vector.extract_strided_slice %1 {offsets = [7, 0], sizes = [1, 256], strides = [1, 1]} : vector<9x256xf32> to vector<1x256xf32>
    %9 = vector.extract_strided_slice %1 {offsets = [8, 0], sizes = [1, 256], strides = [1, 1]} : vector<9x256xf32> to vector<1x256xf32>
    %c0_3 = arith.constant 0 : index
    %c0_4 = arith.constant 0 : index
    %10 = vector.load %arg4[%c0_3, %c0_4] : memref<8x3xf32, #tpu.memory_space<vmem>>, vector<8x3xf32>
    %c17_i32 = arith.constant 17 : i32
    %11 = tpu.dynamic_rotate %0 by %c17_i32 dim 1 : vector<8x256xf32>, i32 -> vector<8x256xf32>
    %12 = vector.broadcast %2 : vector<1x256xf32> to vector<8x256xf32>
    %13 = arith.mulf %11, %12 : vector<8x256xf32>
    %c16_i32 = arith.constant 16 : i32
    %14 = tpu.dynamic_rotate %0 by %c16_i32 dim 1 : vector<8x256xf32>, i32 -> vector<8x256xf32>
    %15 = vector.broadcast %3 : vector<1x256xf32> to vector<8x256xf32>
    %16 = arith.mulf %14, %15 : vector<8x256xf32>
    %c15_i32 = arith.constant 15 : i32
    %17 = tpu.dynamic_rotate %0 by %c15_i32 dim 1 : vector<8x256xf32>, i32 -> vector<8x256xf32>
    %18 = vector.broadcast %4 : vector<1x256xf32> to vector<8x256xf32>
    %19 = arith.mulf %17, %18 : vector<8x256xf32>
    %c1_i32 = arith.constant 1 : i32
    %20 = tpu.dynamic_rotate %0 by %c1_i32 dim 1 : vector<8x256xf32>, i32 -> vector<8x256xf32>
    %21 = vector.broadcast %5 : vector<1x256xf32> to vector<8x256xf32>
    %22 = arith.mulf %20, %21 : vector<8x256xf32>
    %c255_i32 = arith.constant 255 : i32
    %23 = tpu.dynamic_rotate %0 by %c255_i32 dim 1 : vector<8x256xf32>, i32 -> vector<8x256xf32>
    %24 = vector.broadcast %6 : vector<1x256xf32> to vector<8x256xf32>
    %25 = arith.mulf %23, %24 : vector<8x256xf32>
    %c241_i32 = arith.constant 241 : i32
    %26 = tpu.dynamic_rotate %0 by %c241_i32 dim 1 : vector<8x256xf32>, i32 -> vector<8x256xf32>
    %27 = vector.broadcast %7 : vector<1x256xf32> to vector<8x256xf32>
    %28 = arith.mulf %26, %27 : vector<8x256xf32>
    %c240_i32 = arith.constant 240 : i32
    %29 = tpu.dynamic_rotate %0 by %c240_i32 dim 1 : vector<8x256xf32>, i32 -> vector<8x256xf32>
    %30 = vector.broadcast %8 : vector<1x256xf32> to vector<8x256xf32>
    %31 = arith.mulf %29, %30 : vector<8x256xf32>
    %c239_i32 = arith.constant 239 : i32
    %32 = tpu.dynamic_rotate %0 by %c239_i32 dim 1 : vector<8x256xf32>, i32 -> vector<8x256xf32>
    %33 = vector.broadcast %9 : vector<1x256xf32> to vector<8x256xf32>
    %34 = arith.mulf %32, %33 : vector<8x256xf32>
    %35 = tpu.concatenate %13, %16, %19, %22, %0, %25, %28, %31, %34 in 0 : vector<8x256xf32>, vector<8x256xf32>, vector<8x256xf32>, vector<8x256xf32>, vector<8x256xf32>, vector<8x256xf32>, vector<8x256xf32>, vector<8x256xf32>, vector<8x256xf32> -> vector<72x256xf32>
    %36 = arith.truncf %35 : vector<72x256xf32> to vector<72x256xbf16>
    %c0_5 = arith.constant 0 : index
    %c0_6 = arith.constant 0 : index
    %c0_7 = arith.constant 0 : index
    %37 = vector.load %arg3[%c0_5, %c0_6, %c0_7] : memref<3x8x72xbf16, #tpu.memory_space<vmem>>, vector<1x8x72xbf16>
    %38 = vector.shape_cast %37 : vector<1x8x72xbf16> to vector<8x72xbf16>
    %cst = arith.constant dense<0.000000e+00> : vector<8x256xf32>
    %39 = tpu.matmul %38, %36, %cst {dimension_numbers = #tpu.dot_dimension_numbers<[1], [0], [0], [1], [0, 0, 1, 1], [], []>} : vector<8x72xbf16>, vector<72x256xbf16>, vector<8x256xf32> -> vector<8x256xf32>
    %40 = vector.extract_strided_slice %10 {offsets = [0, 0], sizes = [8, 1], strides = [1, 1]} : vector<8x3xf32> to vector<8x1xf32>
    %41 = vector.broadcast %40 : vector<8x1xf32> to vector<8x256xf32>
    %42 = arith.addf %39, %41 : vector<8x256xf32>
    %cst_8 = arith.constant 0.000000e+00 : f32
    %43 = vector.broadcast %cst_8 : f32 to vector<8x256xf32>
    %44 = arith.maximumf %42, %43 : vector<8x256xf32>
    %c17_i32_9 = arith.constant 17 : i32
    %45 = tpu.dynamic_rotate %44 by %c17_i32_9 dim 1 : vector<8x256xf32>, i32 -> vector<8x256xf32>
    %46 = vector.broadcast %2 : vector<1x256xf32> to vector<8x256xf32>
    %47 = arith.mulf %45, %46 : vector<8x256xf32>
    %c16_i32_10 = arith.constant 16 : i32
    %48 = tpu.dynamic_rotate %44 by %c16_i32_10 dim 1 : vector<8x256xf32>, i32 -> vector<8x256xf32>
    %49 = vector.broadcast %3 : vector<1x256xf32> to vector<8x256xf32>
    %50 = arith.mulf %48, %49 : vector<8x256xf32>
    %c15_i32_11 = arith.constant 15 : i32
    %51 = tpu.dynamic_rotate %44 by %c15_i32_11 dim 1 : vector<8x256xf32>, i32 -> vector<8x256xf32>
    %52 = vector.broadcast %4 : vector<1x256xf32> to vector<8x256xf32>
    %53 = arith.mulf %51, %52 : vector<8x256xf32>
    %c1_i32_12 = arith.constant 1 : i32
    %54 = tpu.dynamic_rotate %44 by %c1_i32_12 dim 1 : vector<8x256xf32>, i32 -> vector<8x256xf32>
    %55 = vector.broadcast %5 : vector<1x256xf32> to vector<8x256xf32>
    %56 = arith.mulf %54, %55 : vector<8x256xf32>
    %c255_i32_13 = arith.constant 255 : i32
    %57 = tpu.dynamic_rotate %44 by %c255_i32_13 dim 1 : vector<8x256xf32>, i32 -> vector<8x256xf32>
    %58 = vector.broadcast %6 : vector<1x256xf32> to vector<8x256xf32>
    %59 = arith.mulf %57, %58 : vector<8x256xf32>
    %c241_i32_14 = arith.constant 241 : i32
    %60 = tpu.dynamic_rotate %44 by %c241_i32_14 dim 1 : vector<8x256xf32>, i32 -> vector<8x256xf32>
    %61 = vector.broadcast %7 : vector<1x256xf32> to vector<8x256xf32>
    %62 = arith.mulf %60, %61 : vector<8x256xf32>
    %c240_i32_15 = arith.constant 240 : i32
    %63 = tpu.dynamic_rotate %44 by %c240_i32_15 dim 1 : vector<8x256xf32>, i32 -> vector<8x256xf32>
    %64 = vector.broadcast %8 : vector<1x256xf32> to vector<8x256xf32>
    %65 = arith.mulf %63, %64 : vector<8x256xf32>
    %c239_i32_16 = arith.constant 239 : i32
    %66 = tpu.dynamic_rotate %44 by %c239_i32_16 dim 1 : vector<8x256xf32>, i32 -> vector<8x256xf32>
    %67 = vector.broadcast %9 : vector<1x256xf32> to vector<8x256xf32>
    %68 = arith.mulf %66, %67 : vector<8x256xf32>
    %69 = tpu.concatenate %47, %50, %53, %56, %44, %59, %62, %65, %68 in 0 : vector<8x256xf32>, vector<8x256xf32>, vector<8x256xf32>, vector<8x256xf32>, vector<8x256xf32>, vector<8x256xf32>, vector<8x256xf32>, vector<8x256xf32>, vector<8x256xf32> -> vector<72x256xf32>
    %70 = arith.truncf %69 : vector<72x256xf32> to vector<72x256xbf16>
    %c1 = arith.constant 1 : index
    %c0_17 = arith.constant 0 : index
    %c0_18 = arith.constant 0 : index
    %71 = vector.load %arg3[%c1, %c0_17, %c0_18] : memref<3x8x72xbf16, #tpu.memory_space<vmem>>, vector<1x8x72xbf16>
    %72 = vector.shape_cast %71 : vector<1x8x72xbf16> to vector<8x72xbf16>
    %cst_19 = arith.constant dense<0.000000e+00> : vector<8x256xf32>
    %73 = tpu.matmul %72, %70, %cst_19 {dimension_numbers = #tpu.dot_dimension_numbers<[1], [0], [0], [1], [0, 0, 1, 1], [], []>} : vector<8x72xbf16>, vector<72x256xbf16>, vector<8x256xf32> -> vector<8x256xf32>
    %74 = vector.extract_strided_slice %10 {offsets = [0, 1], sizes = [8, 1], strides = [1, 1]} : vector<8x3xf32> to vector<8x1xf32>
    %75 = vector.broadcast %74 : vector<8x1xf32> to vector<8x256xf32>
    %76 = arith.addf %73, %75 : vector<8x256xf32>
    %cst_20 = arith.constant 0.000000e+00 : f32
    %77 = vector.broadcast %cst_20 : f32 to vector<8x256xf32>
    %78 = arith.maximumf %76, %77 : vector<8x256xf32>
    %c17_i32_21 = arith.constant 17 : i32
    %79 = tpu.dynamic_rotate %78 by %c17_i32_21 dim 1 : vector<8x256xf32>, i32 -> vector<8x256xf32>
    %80 = vector.broadcast %2 : vector<1x256xf32> to vector<8x256xf32>
    %81 = arith.mulf %79, %80 : vector<8x256xf32>
    %c16_i32_22 = arith.constant 16 : i32
    %82 = tpu.dynamic_rotate %78 by %c16_i32_22 dim 1 : vector<8x256xf32>, i32 -> vector<8x256xf32>
    %83 = vector.broadcast %3 : vector<1x256xf32> to vector<8x256xf32>
    %84 = arith.mulf %82, %83 : vector<8x256xf32>
    %c15_i32_23 = arith.constant 15 : i32
    %85 = tpu.dynamic_rotate %78 by %c15_i32_23 dim 1 : vector<8x256xf32>, i32 -> vector<8x256xf32>
    %86 = vector.broadcast %4 : vector<1x256xf32> to vector<8x256xf32>
    %87 = arith.mulf %85, %86 : vector<8x256xf32>
    %c1_i32_24 = arith.constant 1 : i32
    %88 = tpu.dynamic_rotate %78 by %c1_i32_24 dim 1 : vector<8x256xf32>, i32 -> vector<8x256xf32>
    %89 = vector.broadcast %5 : vector<1x256xf32> to vector<8x256xf32>
    %90 = arith.mulf %88, %89 : vector<8x256xf32>
    %c255_i32_25 = arith.constant 255 : i32
    %91 = tpu.dynamic_rotate %78 by %c255_i32_25 dim 1 : vector<8x256xf32>, i32 -> vector<8x256xf32>
    %92 = vector.broadcast %6 : vector<1x256xf32> to vector<8x256xf32>
    %93 = arith.mulf %91, %92 : vector<8x256xf32>
    %c241_i32_26 = arith.constant 241 : i32
    %94 = tpu.dynamic_rotate %78 by %c241_i32_26 dim 1 : vector<8x256xf32>, i32 -> vector<8x256xf32>
    %95 = vector.broadcast %7 : vector<1x256xf32> to vector<8x256xf32>
    %96 = arith.mulf %94, %95 : vector<8x256xf32>
    %c240_i32_27 = arith.constant 240 : i32
    %97 = tpu.dynamic_rotate %78 by %c240_i32_27 dim 1 : vector<8x256xf32>, i32 -> vector<8x256xf32>
    %98 = vector.broadcast %8 : vector<1x256xf32> to vector<8x256xf32>
    %99 = arith.mulf %97, %98 : vector<8x256xf32>
    %c239_i32_28 = arith.constant 239 : i32
    %100 = tpu.dynamic_rotate %78 by %c239_i32_28 dim 1 : vector<8x256xf32>, i32 -> vector<8x256xf32>
    %101 = vector.broadcast %9 : vector<1x256xf32> to vector<8x256xf32>
    %102 = arith.mulf %100, %101 : vector<8x256xf32>
    %103 = tpu.concatenate %81, %84, %87, %90, %78, %93, %96, %99, %102 in 0 : vector<8x256xf32>, vector<8x256xf32>, vector<8x256xf32>, vector<8x256xf32>, vector<8x256xf32>, vector<8x256xf32>, vector<8x256xf32>, vector<8x256xf32>, vector<8x256xf32> -> vector<72x256xf32>
    %104 = arith.truncf %103 : vector<72x256xf32> to vector<72x256xbf16>
    %c2 = arith.constant 2 : index
    %c0_29 = arith.constant 0 : index
    %c0_30 = arith.constant 0 : index
    %105 = vector.load %arg3[%c2, %c0_29, %c0_30] : memref<3x8x72xbf16, #tpu.memory_space<vmem>>, vector<1x8x72xbf16>
    %106 = vector.shape_cast %105 : vector<1x8x72xbf16> to vector<8x72xbf16>
    %cst_31 = arith.constant dense<0.000000e+00> : vector<8x256xf32>
    %107 = tpu.matmul %106, %104, %cst_31 {dimension_numbers = #tpu.dot_dimension_numbers<[1], [0], [0], [1], [0, 0, 1, 1], [], []>} : vector<8x72xbf16>, vector<72x256xbf16>, vector<8x256xf32> -> vector<8x256xf32>
    %108 = vector.extract_strided_slice %10 {offsets = [0, 2], sizes = [8, 1], strides = [1, 1]} : vector<8x3xf32> to vector<8x1xf32>
    %109 = vector.broadcast %108 : vector<8x1xf32> to vector<8x256xf32>
    %110 = arith.addf %107, %109 : vector<8x256xf32>
    %cst_32 = arith.constant 0.000000e+00 : f32
    %111 = vector.broadcast %cst_32 : f32 to vector<8x256xf32>
    %112 = arith.maximumf %110, %111 : vector<8x256xf32>
    %c0_33 = arith.constant 0 : index
    %c0_34 = arith.constant 0 : index
    %113 = vector.load %arg5[%c0_33, %c0_34] : memref<8x8xbf16, #tpu.memory_space<vmem>>, vector<8x8xbf16>
    %114 = arith.truncf %112 : vector<8x256xf32> to vector<8x256xbf16>
    %cst_35 = arith.constant dense<0.000000e+00> : vector<8x256xf32>
    %115 = tpu.matmul %113, %114, %cst_35 {dimension_numbers = #tpu.dot_dimension_numbers<[1], [0], [0], [1], [0, 0, 1, 1], [], []>} : vector<8x8xbf16>, vector<8x256xbf16>, vector<8x256xf32> -> vector<8x256xf32>
    %c0_36 = arith.constant 0 : index
    %c0_37 = arith.constant 0 : index
    %116 = vector.load %arg6[%c0_36, %c0_37] : memref<8x1xf32, #tpu.memory_space<vmem>>, vector<8x1xf32>
    %117 = vector.broadcast %116 : vector<8x1xf32> to vector<8x256xf32>
    %118 = arith.addf %115, %117 : vector<8x256xf32>
    %c0_38 = arith.constant 0 : index
    %c0_39 = arith.constant 0 : index
    %119 = vector.load %arg7[%c0_38, %c0_39] : memref<8x256xf32, #tpu.memory_space<vmem>>, vector<8x256xf32>
    tpu.vector_store %arg7[%c0_38, %c0_39], %118 {strides = array<i32>} : memref<8x256xf32, #tpu.memory_space<vmem>>, vector<8x256xf32>,
    return
  }
  func.func @transform_0(%arg0: i32) -> (i32, i32) {
    %c0_i32 = arith.constant 0 : i32
    %c0_i32_0 = arith.constant 0 : i32
    return %c0_i32, %arg0 : i32, i32
  }
  func.func @transform_1(%arg0: i32) -> (i32, i32) {
    %c0_i32 = arith.constant 0 : i32
    %c0_i32_0 = arith.constant 0 : i32
    %c0_i32_1 = arith.constant 0 : i32
    return %c0_i32, %c0_i32_0 : i32, i32
  }
  func.func @transform_2(%arg0: i32) -> (i32, i32, i32) {
    %c0_i32 = arith.constant 0 : i32
    %c0_i32_0 = arith.constant 0 : i32
    %c0_i32_1 = arith.constant 0 : i32
    %c0_i32_2 = arith.constant 0 : i32
    return %c0_i32, %c0_i32_0, %c0_i32_1 : i32, i32, i32
  }
  func.func @transform_3(%arg0: i32) -> (i32, i32) {
    %c0_i32 = arith.constant 0 : i32
    %c0_i32_0 = arith.constant 0 : i32
    %c0_i32_1 = arith.constant 0 : i32
    return %c0_i32, %c0_i32_0 : i32, i32
  }
  func.func @transform_4(%arg0: i32) -> (i32, i32) {
    %c0_i32 = arith.constant 0 : i32
    %c0_i32_0 = arith.constant 0 : i32
    %c0_i32_1 = arith.constant 0 : i32
    return %c0_i32, %c0_i32_0 : i32, i32
  }
  func.func @transform_5(%arg0: i32) -> (i32, i32) {
    %c0_i32 = arith.constant 0 : i32
    %c0_i32_0 = arith.constant 0 : i32
    %c0_i32_1 = arith.constant 0 : i32
    return %c0_i32, %c0_i32_0 : i32, i32
  }
  func.func @transform_6(%arg0: i32) -> (i32, i32) {
    %c0_i32 = arith.constant 0 : i32
    %c0_i32_0 = arith.constant 0 : i32
    return %c0_i32, %arg0 : i32, i32
  }
}

module attributes {stable_mosaic.version = 11 : i64} {
  func.func @kernel(%arg0: i32, %arg1: memref<8x128xf32, #tpu.memory_space<vmem>>, %arg2: memref<9x128xf32, #tpu.memory_space<vmem>>, %arg3: memref<3x8x72xbf16, #tpu.memory_space<vmem>>, %arg4: memref<8x3xf32, #tpu.memory_space<vmem>>, %arg5: memref<16x8xbf16, #tpu.memory_space<vmem>>, %arg6: memref<16x1xf32, #tpu.memory_space<vmem>>, %arg7: memref<16x128xf32, #tpu.memory_space<vmem>>) attributes {dimension_semantics = [#tpu.dimension_semantics<parallel>], iteration_bounds = array<i64: 1>, scalar_prefetch = 0 : i64, scratch_operands = 0 : i64, tpu.core_type = #tpu.core_type<tc>, window_params = [{transform_indices = @transform_0, window_bounds = array<i64: 8, 128>}, {pipeline_mode = #tpu.pipeline_mode<synchronous>, transform_indices = @transform_1, window_bounds = array<i64: 9, 128>}, {pipeline_mode = #tpu.pipeline_mode<synchronous>, transform_indices = @transform_2, window_bounds = array<i64: 3, 8, 72>}, {pipeline_mode = #tpu.pipeline_mode<synchronous>, transform_indices = @transform_3, window_bounds = array<i64: 8, 3>}, {pipeline_mode = #tpu.pipeline_mode<synchronous>, transform_indices = @transform_4, window_bounds = array<i64: 16, 8>}, {pipeline_mode = #tpu.pipeline_mode<synchronous>, transform_indices = @transform_5, window_bounds = array<i64: 16, 1>}, {transform_indices = @transform_6, window_bounds = array<i64: 16, 128>}]} {
    %c0 = arith.constant 0 : index
    %c0_0 = arith.constant 0 : index
    %0 = vector.load %arg1[%c0, %c0_0] : memref<8x128xf32, #tpu.memory_space<vmem>>, vector<8x128xf32>
    %c0_1 = arith.constant 0 : index
    %c0_2 = arith.constant 0 : index
    %1 = vector.load %arg2[%c0_1, %c0_2] : memref<9x128xf32, #tpu.memory_space<vmem>>, vector<9x128xf32>
    %2 = vector.extract_strided_slice %1 {offsets = [0, 0], sizes = [1, 128], strides = [1, 1]} : vector<9x128xf32> to vector<1x128xf32>
    %3 = vector.extract_strided_slice %1 {offsets = [1, 0], sizes = [1, 128], strides = [1, 1]} : vector<9x128xf32> to vector<1x128xf32>
    %4 = vector.extract_strided_slice %1 {offsets = [2, 0], sizes = [1, 128], strides = [1, 1]} : vector<9x128xf32> to vector<1x128xf32>
    %5 = vector.extract_strided_slice %1 {offsets = [3, 0], sizes = [1, 128], strides = [1, 1]} : vector<9x128xf32> to vector<1x128xf32>
    %6 = vector.extract_strided_slice %1 {offsets = [5, 0], sizes = [1, 128], strides = [1, 1]} : vector<9x128xf32> to vector<1x128xf32>
    %7 = vector.extract_strided_slice %1 {offsets = [6, 0], sizes = [1, 128], strides = [1, 1]} : vector<9x128xf32> to vector<1x128xf32>
    %8 = vector.extract_strided_slice %1 {offsets = [7, 0], sizes = [1, 128], strides = [1, 1]} : vector<9x128xf32> to vector<1x128xf32>
    %9 = vector.extract_strided_slice %1 {offsets = [8, 0], sizes = [1, 128], strides = [1, 1]} : vector<9x128xf32> to vector<1x128xf32>
    %c0_3 = arith.constant 0 : index
    %c0_4 = arith.constant 0 : index
    %10 = vector.load %arg4[%c0_3, %c0_4] : memref<8x3xf32, #tpu.memory_space<vmem>>, vector<8x3xf32>
    %c9_i32 = arith.constant 9 : i32
    %11 = tpu.dynamic_rotate %0 by %c9_i32 dim 1 : vector<8x128xf32>, i32 -> vector<8x128xf32>
    %12 = vector.broadcast %2 : vector<1x128xf32> to vector<8x128xf32>
    %13 = arith.mulf %11, %12 : vector<8x128xf32>
    %c8_i32 = arith.constant 8 : i32
    %14 = tpu.dynamic_rotate %0 by %c8_i32 dim 1 : vector<8x128xf32>, i32 -> vector<8x128xf32>
    %15 = vector.broadcast %3 : vector<1x128xf32> to vector<8x128xf32>
    %16 = arith.mulf %14, %15 : vector<8x128xf32>
    %c7_i32 = arith.constant 7 : i32
    %17 = tpu.dynamic_rotate %0 by %c7_i32 dim 1 : vector<8x128xf32>, i32 -> vector<8x128xf32>
    %18 = vector.broadcast %4 : vector<1x128xf32> to vector<8x128xf32>
    %19 = arith.mulf %17, %18 : vector<8x128xf32>
    %c1_i32 = arith.constant 1 : i32
    %20 = tpu.dynamic_rotate %0 by %c1_i32 dim 1 : vector<8x128xf32>, i32 -> vector<8x128xf32>
    %21 = vector.broadcast %5 : vector<1x128xf32> to vector<8x128xf32>
    %22 = arith.mulf %20, %21 : vector<8x128xf32>
    %c127_i32 = arith.constant 127 : i32
    %23 = tpu.dynamic_rotate %0 by %c127_i32 dim 1 : vector<8x128xf32>, i32 -> vector<8x128xf32>
    %24 = vector.broadcast %6 : vector<1x128xf32> to vector<8x128xf32>
    %25 = arith.mulf %23, %24 : vector<8x128xf32>
    %c121_i32 = arith.constant 121 : i32
    %26 = tpu.dynamic_rotate %0 by %c121_i32 dim 1 : vector<8x128xf32>, i32 -> vector<8x128xf32>
    %27 = vector.broadcast %7 : vector<1x128xf32> to vector<8x128xf32>
    %28 = arith.mulf %26, %27 : vector<8x128xf32>
    %c120_i32 = arith.constant 120 : i32
    %29 = tpu.dynamic_rotate %0 by %c120_i32 dim 1 : vector<8x128xf32>, i32 -> vector<8x128xf32>
    %30 = vector.broadcast %8 : vector<1x128xf32> to vector<8x128xf32>
    %31 = arith.mulf %29, %30 : vector<8x128xf32>
    %c119_i32 = arith.constant 119 : i32
    %32 = tpu.dynamic_rotate %0 by %c119_i32 dim 1 : vector<8x128xf32>, i32 -> vector<8x128xf32>
    %33 = vector.broadcast %9 : vector<1x128xf32> to vector<8x128xf32>
    %34 = arith.mulf %32, %33 : vector<8x128xf32>
    %35 = tpu.concatenate %13, %16, %19, %22, %0, %25, %28, %31, %34 in 0 : vector<8x128xf32>, vector<8x128xf32>, vector<8x128xf32>, vector<8x128xf32>, vector<8x128xf32>, vector<8x128xf32>, vector<8x128xf32>, vector<8x128xf32>, vector<8x128xf32> -> vector<72x128xf32>
    %36 = arith.truncf %35 : vector<72x128xf32> to vector<72x128xbf16>
    %c0_5 = arith.constant 0 : index
    %c0_6 = arith.constant 0 : index
    %c0_7 = arith.constant 0 : index
    %37 = vector.load %arg3[%c0_5, %c0_6, %c0_7] : memref<3x8x72xbf16, #tpu.memory_space<vmem>>, vector<1x8x72xbf16>
    %38 = vector.shape_cast %37 : vector<1x8x72xbf16> to vector<8x72xbf16>
    %cst = arith.constant dense<0.000000e+00> : vector<8x128xf32>
    %39 = tpu.matmul %38, %36, %cst {dimension_numbers = #tpu.dot_dimension_numbers<[1], [0], [0], [1], [0, 0, 1, 1], [], []>} : vector<8x72xbf16>, vector<72x128xbf16>, vector<8x128xf32> -> vector<8x128xf32>
    %40 = vector.extract_strided_slice %10 {offsets = [0, 0], sizes = [8, 1], strides = [1, 1]} : vector<8x3xf32> to vector<8x1xf32>
    %41 = vector.broadcast %40 : vector<8x1xf32> to vector<8x128xf32>
    %42 = arith.addf %39, %41 : vector<8x128xf32>
    %cst_8 = arith.constant 0.000000e+00 : f32
    %43 = vector.broadcast %cst_8 : f32 to vector<8x128xf32>
    %44 = arith.maximumf %42, %43 : vector<8x128xf32>
    %c9_i32_9 = arith.constant 9 : i32
    %45 = tpu.dynamic_rotate %44 by %c9_i32_9 dim 1 : vector<8x128xf32>, i32 -> vector<8x128xf32>
    %46 = vector.broadcast %2 : vector<1x128xf32> to vector<8x128xf32>
    %47 = arith.mulf %45, %46 : vector<8x128xf32>
    %c8_i32_10 = arith.constant 8 : i32
    %48 = tpu.dynamic_rotate %44 by %c8_i32_10 dim 1 : vector<8x128xf32>, i32 -> vector<8x128xf32>
    %49 = vector.broadcast %3 : vector<1x128xf32> to vector<8x128xf32>
    %50 = arith.mulf %48, %49 : vector<8x128xf32>
    %c7_i32_11 = arith.constant 7 : i32
    %51 = tpu.dynamic_rotate %44 by %c7_i32_11 dim 1 : vector<8x128xf32>, i32 -> vector<8x128xf32>
    %52 = vector.broadcast %4 : vector<1x128xf32> to vector<8x128xf32>
    %53 = arith.mulf %51, %52 : vector<8x128xf32>
    %c1_i32_12 = arith.constant 1 : i32
    %54 = tpu.dynamic_rotate %44 by %c1_i32_12 dim 1 : vector<8x128xf32>, i32 -> vector<8x128xf32>
    %55 = vector.broadcast %5 : vector<1x128xf32> to vector<8x128xf32>
    %56 = arith.mulf %54, %55 : vector<8x128xf32>
    %c127_i32_13 = arith.constant 127 : i32
    %57 = tpu.dynamic_rotate %44 by %c127_i32_13 dim 1 : vector<8x128xf32>, i32 -> vector<8x128xf32>
    %58 = vector.broadcast %6 : vector<1x128xf32> to vector<8x128xf32>
    %59 = arith.mulf %57, %58 : vector<8x128xf32>
    %c121_i32_14 = arith.constant 121 : i32
    %60 = tpu.dynamic_rotate %44 by %c121_i32_14 dim 1 : vector<8x128xf32>, i32 -> vector<8x128xf32>
    %61 = vector.broadcast %7 : vector<1x128xf32> to vector<8x128xf32>
    %62 = arith.mulf %60, %61 : vector<8x128xf32>
    %c120_i32_15 = arith.constant 120 : i32
    %63 = tpu.dynamic_rotate %44 by %c120_i32_15 dim 1 : vector<8x128xf32>, i32 -> vector<8x128xf32>
    %64 = vector.broadcast %8 : vector<1x128xf32> to vector<8x128xf32>
    %65 = arith.mulf %63, %64 : vector<8x128xf32>
    %c119_i32_16 = arith.constant 119 : i32
    %66 = tpu.dynamic_rotate %44 by %c119_i32_16 dim 1 : vector<8x128xf32>, i32 -> vector<8x128xf32>
    %67 = vector.broadcast %9 : vector<1x128xf32> to vector<8x128xf32>
    %68 = arith.mulf %66, %67 : vector<8x128xf32>
    %69 = tpu.concatenate %47, %50, %53, %56, %44, %59, %62, %65, %68 in 0 : vector<8x128xf32>, vector<8x128xf32>, vector<8x128xf32>, vector<8x128xf32>, vector<8x128xf32>, vector<8x128xf32>, vector<8x128xf32>, vector<8x128xf32>, vector<8x128xf32> -> vector<72x128xf32>
    %70 = arith.truncf %69 : vector<72x128xf32> to vector<72x128xbf16>
    %c1 = arith.constant 1 : index
    %c0_17 = arith.constant 0 : index
    %c0_18 = arith.constant 0 : index
    %71 = vector.load %arg3[%c1, %c0_17, %c0_18] : memref<3x8x72xbf16, #tpu.memory_space<vmem>>, vector<1x8x72xbf16>
    %72 = vector.shape_cast %71 : vector<1x8x72xbf16> to vector<8x72xbf16>
    %cst_19 = arith.constant dense<0.000000e+00> : vector<8x128xf32>
    %73 = tpu.matmul %72, %70, %cst_19 {dimension_numbers = #tpu.dot_dimension_numbers<[1], [0], [0], [1], [0, 0, 1, 1], [], []>} : vector<8x72xbf16>, vector<72x128xbf16>, vector<8x128xf32> -> vector<8x128xf32>
    %74 = vector.extract_strided_slice %10 {offsets = [0, 1], sizes = [8, 1], strides = [1, 1]} : vector<8x3xf32> to vector<8x1xf32>
    %75 = vector.broadcast %74 : vector<8x1xf32> to vector<8x128xf32>
    %76 = arith.addf %73, %75 : vector<8x128xf32>
    %cst_20 = arith.constant 0.000000e+00 : f32
    %77 = vector.broadcast %cst_20 : f32 to vector<8x128xf32>
    %78 = arith.maximumf %76, %77 : vector<8x128xf32>
    %c9_i32_21 = arith.constant 9 : i32
    %79 = tpu.dynamic_rotate %78 by %c9_i32_21 dim 1 : vector<8x128xf32>, i32 -> vector<8x128xf32>
    %80 = vector.broadcast %2 : vector<1x128xf32> to vector<8x128xf32>
    %81 = arith.mulf %79, %80 : vector<8x128xf32>
    %c8_i32_22 = arith.constant 8 : i32
    %82 = tpu.dynamic_rotate %78 by %c8_i32_22 dim 1 : vector<8x128xf32>, i32 -> vector<8x128xf32>
    %83 = vector.broadcast %3 : vector<1x128xf32> to vector<8x128xf32>
    %84 = arith.mulf %82, %83 : vector<8x128xf32>
    %c7_i32_23 = arith.constant 7 : i32
    %85 = tpu.dynamic_rotate %78 by %c7_i32_23 dim 1 : vector<8x128xf32>, i32 -> vector<8x128xf32>
    %86 = vector.broadcast %4 : vector<1x128xf32> to vector<8x128xf32>
    %87 = arith.mulf %85, %86 : vector<8x128xf32>
    %c1_i32_24 = arith.constant 1 : i32
    %88 = tpu.dynamic_rotate %78 by %c1_i32_24 dim 1 : vector<8x128xf32>, i32 -> vector<8x128xf32>
    %89 = vector.broadcast %5 : vector<1x128xf32> to vector<8x128xf32>
    %90 = arith.mulf %88, %89 : vector<8x128xf32>
    %c127_i32_25 = arith.constant 127 : i32
    %91 = tpu.dynamic_rotate %78 by %c127_i32_25 dim 1 : vector<8x128xf32>, i32 -> vector<8x128xf32>
    %92 = vector.broadcast %6 : vector<1x128xf32> to vector<8x128xf32>
    %93 = arith.mulf %91, %92 : vector<8x128xf32>
    %c121_i32_26 = arith.constant 121 : i32
    %94 = tpu.dynamic_rotate %78 by %c121_i32_26 dim 1 : vector<8x128xf32>, i32 -> vector<8x128xf32>
    %95 = vector.broadcast %7 : vector<1x128xf32> to vector<8x128xf32>
    %96 = arith.mulf %94, %95 : vector<8x128xf32>
    %c120_i32_27 = arith.constant 120 : i32
    %97 = tpu.dynamic_rotate %78 by %c120_i32_27 dim 1 : vector<8x128xf32>, i32 -> vector<8x128xf32>
    %98 = vector.broadcast %8 : vector<1x128xf32> to vector<8x128xf32>
    %99 = arith.mulf %97, %98 : vector<8x128xf32>
    %c119_i32_28 = arith.constant 119 : i32
    %100 = tpu.dynamic_rotate %78 by %c119_i32_28 dim 1 : vector<8x128xf32>, i32 -> vector<8x128xf32>
    %101 = vector.broadcast %9 : vector<1x128xf32> to vector<8x128xf32>
    %102 = arith.mulf %100, %101 : vector<8x128xf32>
    %103 = tpu.concatenate %81, %84, %87, %90, %78, %93, %96, %99, %102 in 0 : vector<8x128xf32>, vector<8x128xf32>, vector<8x128xf32>, vector<8x128xf32>, vector<8x128xf32>, vector<8x128xf32>, vector<8x128xf32>, vector<8x128xf32>, vector<8x128xf32> -> vector<72x128xf32>
    %104 = arith.truncf %103 : vector<72x128xf32> to vector<72x128xbf16>
    %c2 = arith.constant 2 : index
    %c0_29 = arith.constant 0 : index
    %c0_30 = arith.constant 0 : index
    %105 = vector.load %arg3[%c2, %c0_29, %c0_30] : memref<3x8x72xbf16, #tpu.memory_space<vmem>>, vector<1x8x72xbf16>
    %106 = vector.shape_cast %105 : vector<1x8x72xbf16> to vector<8x72xbf16>
    %cst_31 = arith.constant dense<0.000000e+00> : vector<8x128xf32>
    %107 = tpu.matmul %106, %104, %cst_31 {dimension_numbers = #tpu.dot_dimension_numbers<[1], [0], [0], [1], [0, 0, 1, 1], [], []>} : vector<8x72xbf16>, vector<72x128xbf16>, vector<8x128xf32> -> vector<8x128xf32>
    %108 = vector.extract_strided_slice %10 {offsets = [0, 2], sizes = [8, 1], strides = [1, 1]} : vector<8x3xf32> to vector<8x1xf32>
    %109 = vector.broadcast %108 : vector<8x1xf32> to vector<8x128xf32>
    %110 = arith.addf %107, %109 : vector<8x128xf32>
    %cst_32 = arith.constant 0.000000e+00 : f32
    %111 = vector.broadcast %cst_32 : f32 to vector<8x128xf32>
    %112 = arith.maximumf %110, %111 : vector<8x128xf32>
    %c0_33 = arith.constant 0 : index
    %c0_34 = arith.constant 0 : index
    %113 = vector.load %arg5[%c0_33, %c0_34] : memref<16x8xbf16, #tpu.memory_space<vmem>>, vector<16x8xbf16>
    %114 = arith.truncf %112 : vector<8x128xf32> to vector<8x128xbf16>
    %cst_35 = arith.constant dense<0.000000e+00> : vector<16x128xf32>
    %115 = tpu.matmul %113, %114, %cst_35 {dimension_numbers = #tpu.dot_dimension_numbers<[1], [0], [0], [1], [0, 0, 1, 1], [], []>} : vector<16x8xbf16>, vector<8x128xbf16>, vector<16x128xf32> -> vector<16x128xf32>
    %c0_36 = arith.constant 0 : index
    %c0_37 = arith.constant 0 : index
    %116 = vector.load %arg6[%c0_36, %c0_37] : memref<16x1xf32, #tpu.memory_space<vmem>>, vector<16x1xf32>
    %117 = vector.broadcast %116 : vector<16x1xf32> to vector<16x128xf32>
    %118 = arith.addf %115, %117 : vector<16x128xf32>
    %c0_38 = arith.constant 0 : index
    %c0_39 = arith.constant 0 : index
    %119 = vector.load %arg7[%c0_38, %c0_39] : memref<16x128xf32, #tpu.memory_space<vmem>>, vector<16x128xf32>
    tpu.vector_store %arg7[%c0_38, %c0_39], %118 {strides = array<i32>} : memref<16x128xf32, #tpu.memory_space<vmem>>, vector<16x128xf32>,
    return
  }
  func.func @transform_0(%arg0: i32) -> (i32, i32) {
    %c0_i32 = arith.constant 0 : i32
    %c0_i32_0 = arith.constant 0 : i32
    return %c0_i32, %arg0 : i32, i32
  }
  func.func @transform_1(%arg0: i32) -> (i32, i32) {
    %c0_i32 = arith.constant 0 : i32
    %c0_i32_0 = arith.constant 0 : i32
    %c0_i32_1 = arith.constant 0 : i32
    return %c0_i32, %c0_i32_0 : i32, i32
  }
  func.func @transform_2(%arg0: i32) -> (i32, i32, i32) {
    %c0_i32 = arith.constant 0 : i32
    %c0_i32_0 = arith.constant 0 : i32
    %c0_i32_1 = arith.constant 0 : i32
    %c0_i32_2 = arith.constant 0 : i32
    return %c0_i32, %c0_i32_0, %c0_i32_1 : i32, i32, i32
  }
  func.func @transform_3(%arg0: i32) -> (i32, i32) {
    %c0_i32 = arith.constant 0 : i32
    %c0_i32_0 = arith.constant 0 : i32
    %c0_i32_1 = arith.constant 0 : i32
    return %c0_i32, %c0_i32_0 : i32, i32
  }
  func.func @transform_4(%arg0: i32) -> (i32, i32) {
    %c0_i32 = arith.constant 0 : i32
    %c0_i32_0 = arith.constant 0 : i32
    %c0_i32_1 = arith.constant 0 : i32
    return %c0_i32, %c0_i32_0 : i32, i32
  }
  func.func @transform_5(%arg0: i32) -> (i32, i32) {
    %c0_i32 = arith.constant 0 : i32
    %c0_i32_0 = arith.constant 0 : i32
    %c0_i32_1 = arith.constant 0 : i32
    return %c0_i32, %c0_i32_0 : i32, i32
  }
  func.func @transform_6(%arg0: i32) -> (i32, i32) {
    %c0_i32 = arith.constant 0 : i32
    %c0_i32_0 = arith.constant 0 : i32
    return %c0_i32, %arg0 : i32, i32
  }
}

</mosaic_0001>

<bundles_post_ra>
// kernel: separable_encoder.2
= control target key start
LH: loop header
LB: loop body
LE: loop exit
PB: predicated region body
PF: predicated region fallthrough
CT: control target
= control target key end

     0   :  { %s954_s21 = smov 0   ;;  %s1336_s0 = inlined_call_operand.vmem [shape: f32[8,512], index: 0, kind: input, shape index: {}]   ;;  %s1337_s1 = inlined_call_operand.vmem [shape: f32[9,256], index: 1, kind: input, shape index: {}]   ;;  %s1338_s2 = inlined_call_operand.vmem [shape: bf16[3,8,72], index: 2, kind: input, shape index: {}]   ;;  %s1339_s3 = inlined_call_operand.vmem [shape: f32[8,3], index: 3, kind: input, shape index: {}]   ;;  %s1340_s4 = inlined_call_operand.vmem [shape: bf16[8,8], index: 4, kind: input, shape index: {}]   ;;  %s1341_s5 = inlined_call_operand.vmem [shape: f32[8,1], index: 5, kind: input, shape index: {}]   ;;  %s1342_s6 = inlined_call_operand.vmem [shape: f32[8,512], index: 6, kind: output, shape index: {}]  }
   0x1 LB: > { %s853_s22 = sadd.s32 4294967295, %s906_s21   ;;  %p857_p0 = scmp.ge.s32.totalorder %s906_s21, 1  ;;  %s906_s21 = sphi %s954_s21, %s16_s21  }
   0x2   : > { %p213_p1 = scmp.lt.s32.totalorder %s906_s21, 3 }
   0x4   : > { %p214_p2 = pnand %p857_p0, %p213_p1 }
   0x5   : > { %s858_s23 = sshll.u32 (!%p214_p2), %s853_s22, 1  ;;  %s908_s28 = smov (!%p214_p2), 16   ;;  %v914_v2 = vmov (!%p214_p2), 0   ;;  %v1013_v3 = vld [vmem:[%s1339_s3] sm:$0xff] (!%p214_p2)  ;;  %v267_v4 = vlaneseq (!%p214_p2)  ;;  %v1030_v10 = vld [vmem:[%s1337_s1 + $0x8] sm:$0xff] (!%p214_p2)  ;;  %vm421_vm8 = vcmask (!%p214_p2), 1043456  }
   0x6   : > { %217 = sbr.rel (%p214_p2) target bundleno = 1352 (0x548), region = 44  ;;  %p244_p3 = scmp.lt.s32.totalorder (!%p214_p2), %s858_s23, 3  ;;  %460 = vmatprep.mubr.bf16.mxu0 (!%p214_p2), %v914_v2  ;;  %895 = vset.pattern.permute.xlu0 (!%p214_p2), %v914_v2  ;;  %v1025_v9 = vld [vmem:[%s1337_s1] sm:$0xff] (!%p214_p2)  ;;  %vm417_vm9 = vcmask (!%p214_p2), 588800   ;;  %vm744_vm10 = vcmask (!%p214_p2), 64512  }
   0x7   : > { %s909_s29 = smov (!%p214_p2), 17   ;;  %s910_s30 = smov (!%p214_p2), 15   ;;  %592 = vmatprep.mubr.bf16.mxu1 (!%p214_p2), %v914_v2  ;;  %898 = vset.pattern.permute.xlu1 (!%p214_p2), %v914_v2  ;;  %v1016_v5 = vshrl.u32 (!%p214_p2), %v267_v4, 7  ;;  %v1018_v6 = vand.u32 (!%p214_p2), 127, %v267_v4 }
   0x8   : > { %s911_s7 = smov (!%p214_p2), 1   ;;  %s912_s8 = smov (!%p214_p2), 127  }
   0x9   : > { %s913_s9 = smov (!%p214_p2), 113   ;;  %s915_s10 = smov (!%p214_p2), 112   ;;  %v291_v7 = vsub.s32 (!%p214_p2), 1, %v1016_v5  ;;  %v274_v8 = vsub.s32 (!%p214_p2), 0, %v1016_v5  ;;  %vm286_vm0 = vcmp.lt.s32.totalorder (!%p214_p2), %v1018_v6, 16  ;;  %vm269_vm1 = vcmp.lt.s32.totalorder (!%p214_p2), %v1018_v6, 17 }
   0xa   : > { %s916_s11 = smov (!%p214_p2), 111   ;;  %v308_v19 = vsub.s32 (!%p214_p2), 2, %v1016_v5  ;;  %v325_v20 = vsub.s32 (!%p214_p2), 3, %v1016_v5  ;;  %vm303_vm2 = vcmp.lt.s32.totalorder (!%p214_p2), %v1018_v6, 15  ;;  %v342_v34 = vsub.s32 (!%p214_p2), 5, %v1016_v5 }
   0xb   : > { %v1035_v13 = vrot.slane (!%p214_p2), %v1025_v9, %v291_v7  ;;  %v1038_v14 = vrot.slane (!%p214_p2), %v1025_v9, %v274_v8  ;;  %v1041_v15 = vrot.slane (!%p214_p2), %v1030_v10, %v274_v8  ;;  %v1044_v16 = vrot.slane (!%p214_p2), %v1030_v10, %v291_v7 }
   0xc   : > { %v1062_v33 = vrot.slane (!%p214_p2), %v1025_v9, %v308_v19  ;;  %v1066_v35 = vrot.slane (!%p214_p2), %v1030_v10, %v308_v19  ;;  %vm320_vm3 = vcmp.lt.s32.totalorder (!%p214_p2), %v1018_v6, 1  ;;  %v1070_v36 = vrot.slane (!%p214_p2), %v1025_v9, %v325_v20 }
   0xd   : > { %s1344_s23 = smov (!%p244_p3, %s858_s23), 3  ;;  %v1073_v37 = vrot.slane %v1030_v10, %v325_v20  ;;  %vm337_vm4 = vcmp.lt.s32.totalorder %v1018_v6, 127  ;;  %v1085_v44 = vrot.slane %v1025_v9, %v342_v34  ;;  %v1088_v45 = vrot.slane %v1030_v10, %v342_v34 }
   0xe   : > { %s859_s24 = sshll.u32 %s1344_s23, 3  ;;  %v359_v56 = vsub.s32 6, %v1016_v5  ;;  %v376_v59 = vsub.s32 7, %v1016_v5  ;;  %vm354_vm5 = vcmp.lt.s32.totalorder %v1018_v6, 113  ;;  %vm371_vm6 = vcmp.lt.s32.totalorder %v1018_v6, 112 }
   0xf   : > { %s247_s27 = scalar_lea.vmem %s1336_s0, %s859_s24  ;;  %vm388_vm7 = vcmp.lt.s32.totalorder %v1018_v6, 111  ;;  %v738_v6 = vld [vmem:[%s1341_s5] sm:$0xff]  ;;  %s253_s13 = scalar_lea.vmem %s1342_s6, %s859_s24 }
  0x10   : > { %v970_v0 = vld [vmem:[%s247_s27] sm:$0xff]  ;;  %v976_v1 = vld [vmem:[%s247_s27 + $0x8] sm:$0xff]  ;;  %v1106_v4 = vrot.slane %v1025_v9, %v359_v56  ;;  %v1109_v7 = vrot.slane %v1030_v10, %v359_v56  ;;  %v1113_v5 = vrot.slane %v1025_v9, %v376_v59  ;;  %v1116_v8 = vrot.slane %v1030_v10, %v376_v59 }
  0x11   : > { %282 = vrot.lane.b32.xlu1 %v970_v0, %s908_s28  ;;  %263 = vrot.lane.b32.xlu0 %v970_v0, %s909_s29 }
  0x15   : > { %284 = vrot.lane.b32.xlu1 %v976_v1, %s908_s28  ;;  %265 = vrot.lane.b32.xlu0 %v976_v1, %s909_s29 }
  0x19   : > { %301 = vrot.lane.b32.xlu1 %v976_v1, %s910_s30  ;;  %299 = vrot.lane.b32.xlu0 %v970_v0, %s910_s30 }
  0x1d   : > { %318 = vrot.lane.b32.xlu1 %v976_v1, %s911_s7  ;;  %316 = vrot.lane.b32.xlu0 %v970_v0, %s911_s7 }
  0x21   : > { %335 = vrot.lane.b32.xlu1 %v976_v1, %s912_s8  ;;  %333 = vrot.lane.b32.xlu0 %v970_v0, %s912_s8 }
  0x25   : > { %352 = vrot.lane.b32.xlu1 %v976_v1, %s913_s9  ;;  %350 = vrot.lane.b32.xlu0 %v970_v0, %s913_s9 }
  0x29   : > { %369 = vrot.lane.b32.xlu1 %v976_v1, %s915_s10  ;;  %367 = vrot.lane.b32.xlu0 %v970_v0, %s915_s10 }
  0x2d   : > { %386 = vrot.lane.b32.xlu1 %v976_v1, %s916_s11  ;;  %384 = vrot.lane.b32.xlu0 %v970_v0, %s916_s11 }
  0x31   : > { %414 = vperm.xlu0 %895, %v1013_v3  }
  0x83   : > { %v283_v11 = vpop.permute.xlu1 %282  ;;  %v264_v12 = vpop.permute.xlu0 %263 }
  0x87   : > { %v285_v17 = vpop.permute.xlu1 %284  ;;  %v266_v18 = vpop.permute.xlu0 %265 }
  0x88   : > { %v287_v21 = vsel %vm286_vm0, %v283_v11, %v285_v17  ;;  %v288_v22 = vsel %vm286_vm0, %v285_v17, %v283_v11  ;;  %v270_v23 = vsel %vm269_vm1, %v264_v12, %v266_v18  ;;  %v271_v24 = vsel %vm269_vm1, %v266_v18, %v264_v12 }
  0x89   : > { %v297_v25 = vmul.f32 %v1035_v13, %v288_v22  ;;  %v280_v26 = vmul.f32 %v1038_v14, %v271_v24  ;;  %v281_v27 = vmul.f32 %v1041_v15, %v270_v23  ;;  %v298_v28 = vmul.f32 %v1044_v16, %v287_v21  ;;  %v1134_v21 = vld [vmem:[%s1337_s1 + $0x10] ss:$0 sm:$0xff]  ;;  %v1139_v22 = vld [vmem:[%s1337_s1 + $0x18] ss:$0 sm:$0xff] }
  0x8b   : > { %v302_v29 = vpop.permute.xlu1 %301  ;;  %v300_v30 = vpop.permute.xlu0 %299  ;;  %v402_v31 = vpack.c.bf16 %v298_v28, %v281_v27  ;;  %v401_v32 = vpack.c.bf16 %v297_v25, %v280_v26 }
  0x8c   : > { %v304_v38 = vsel %vm303_vm2, %v300_v30, %v302_v29  ;;  %v305_v39 = vsel %vm303_vm2, %v302_v29, %v300_v30 }
  0x8d   : > { %428 = vmatprep.subr.bf16.mxu0 %v402_v31  ;;  %v314_v46 = vmul.f32 %v1062_v33, %v305_v39  ;;  %v315_v47 = vmul.f32 %v1066_v35, %v304_v38  ;;  %v411_v38 = vld [vmem:[%s1338_s2] sm:$0xf] }
  0x8e   : > { %429 = vmatpush1.bf16.msra.mxu0 %v401_v32 }
  0x8f   : > { %v319_v40 = vpop.permute.xlu1 %318  ;;  %v317_v41 = vpop.permute.xlu0 %316 }
  0x90   : > { %v321_v42 = vsel %vm320_vm3, %v317_v41, %v319_v40  ;;  %v322_v43 = vsel %vm320_vm3, %v319_v40, %v317_v41 }
  0x91   : > { %v331_v48 = vmul.f32 %v1070_v36, %v322_v43  ;;  %v332_v49 = vmul.f32 %v1073_v37, %v321_v42 }
  0x93   : > { %v336_v50 = vpop.permute.xlu1 %335  ;;  %v334_v51 = vpop.permute.xlu0 %333  ;;  %v404_v52 = vpack.c.bf16 %v332_v49, %v315_v47  ;;  %v403_v53 = vpack.c.bf16 %v331_v48, %v314_v46 }
  0x94   : > { %v338_v54 = vsel %vm337_vm4, %v334_v51, %v336_v50  ;;  %v339_v55 = vsel %vm337_vm4, %v336_v50, %v334_v51  ;;  %v917_v50 = vmov 1  }
  0x95   : > { %v348_v57 = vmul.f32 %v1085_v44, %v338_v54  ;;  %v349_v58 = vmul.f32 %v1088_v45, %v339_v55  ;;  %430 = vmatprep.subr.bf16.mxu0 %v404_v52  ;;  %896 = vset.pattern.permute.xlu0 %v917_v50 }
  0x96   : > { %431 = vmatpush1.bf16.msra.mxu0 %v403_v53 }
  0x97   : > { %v353_v60 = vpop.permute.xlu1 %352  ;;  %v351_v61 = vpop.permute.xlu0 %350  ;;  %v406_v62 = vpack.c.bf16 %v349_v58, %v976_v1  ;;  %v405_v63 = vpack.c.bf16 %v348_v57, %v970_v0 }
  0x98   : > { %v355_v1 = vsel %vm354_vm5, %v351_v61, %v353_v60  ;;  %v356_v0 = vsel %vm354_vm5, %v353_v60, %v351_v61 }
  0x99   : > { %432 = vmatprep.subr.bf16.mxu0 %v406_v62  ;;  %v365_v9 = vmul.f32 %v1106_v4, %v355_v1  ;;  %v366_v10 = vmul.f32 %v1109_v7, %v356_v0 }
  0x9a   : > { %433 = vmatpush1.bf16.msra.mxu0 %v405_v63 }
  0x9b   : > { %v370_v11 = vpop.permute.xlu1 %369  ;;  %v368_v12 = vpop.permute.xlu0 %367 }
  0x9c   : > { %v372_v17 = vsel %vm371_vm6, %v368_v12, %v370_v11  ;;  %v373_v18 = vsel %vm371_vm6, %v370_v11, %v368_v12 }
  0x9d   : > { %v382_v19 = vmul.f32 %v1113_v5, %v372_v17  ;;  %v383_v20 = vmul.f32 %v1116_v8, %v373_v18 }
  0x9f   : > { %v387_v23 = vpop.permute.xlu1 %386  ;;  %v385_v24 = vpop.permute.xlu0 %384  ;;  %v408_v25 = vpack.c.bf16 %v383_v20, %v366_v10  ;;  %v407_v26 = vpack.c.bf16 %v382_v19, %v365_v9 }
  0xa0   : > { %v389_v27 = vsel %vm388_vm7, %v385_v24, %v387_v23  ;;  %v390_v28 = vsel %vm388_vm7, %v387_v23, %v385_v24 }
  0xa1   : > { %v399_v29 = vmul.f32 %v1134_v21, %v389_v27  ;;  %v400_v30 = vmul.f32 %v1139_v22, %v390_v28  ;;  %434 = vmatprep.subr.bf16.mxu0 %v408_v25 }
  0xa2   : > { %435 = vmatpush1.bf16.msra.mxu0 %v407_v26 }
  0xa3   : > { %v409_v31 = vpack.c.bf16 %v399_v29, %v399_v29  ;;  %v410_v32 = vpack.c.bf16 %v400_v30, %v400_v30 }
  0xa5   : > { %864 = vmatprep.subr.msk.bf16.mxu0 %vm421_vm8, %v410_v32  ;;  %v423_v34 = vsel %vm421_vm8, %v409_v31, 0 }
  0xa6   : > { %437 = vmatpush1.bf16.msra.mxu0 %v423_v34 }
  0xa9   : > { %865 = vmatmul.mubr.msk.bf16.vlgmr.msra.gmra.mrb[0].mxu0 %vm417_vm9, %v411_v38 }
  0xaa   : > { %724 = vmatprep.mubr.bf16.mxu0 %v914_v2 }
  0xb0   : > { %v415_v39 = vpop.permute.xlu0 %414 }
 0x17c   : > { %v462_v40 = vpop.f32.mrb[0].mxu0 }
 0x17d   : > { %v463_v41 = vadd.f32 %v462_v40, %v415_v39  ;;  %v464_v42 = vpop.f32.mrb[1].mxu0 }
 0x17e   : > { %v466_v43 = vpop.f32.mrb[2].mxu0  ;;  %v465_v47 = vadd.f32 %v464_v42, %v415_v39 }
 0x17f   : > { %v1154_v46 = vmax.f32 %v463_v41, 0.0  ;;  %v467_v48 = vpop.f32.mrb[3].mxu0 }
 0x180   : > { %v470_v49 = vmax.f32 %v465_v47, 0.0 }
 0x181   : > { %479 = vrot.lane.b32.xlu0 %v1154_v46, %s908_s28  ;;  %471 = vrot.lane.b32.xlu1 %v1154_v46, %s909_s29 }
 0x185   : > { %487 = vrot.lane.b32.xlu0 %v1154_v46, %s910_s30  ;;  %473 = vrot.lane.b32.xlu1 %v470_v49, %s909_s29 }
 0x189   : > { %495 = vrot.lane.b32.xlu0 %v1154_v46, %s911_s7  ;;  %481 = vrot.lane.b32.xlu1 %v470_v49, %s908_s28 }
 0x18d   : > { %503 = vrot.lane.b32.xlu0 %v1154_v46, %s912_s8  ;;  %489 = vrot.lane.b32.xlu1 %v470_v49, %s910_s30 }
 0x191   : > { %511 = vrot.lane.b32.xlu0 %v1154_v46, %s913_s9  ;;  %497 = vrot.lane.b32.xlu1 %v470_v49, %s911_s7 }
 0x195   : > { %519 = vrot.lane.b32.xlu0 %v1154_v46, %s915_s10  ;;  %505 = vrot.lane.b32.xlu1 %v470_v49, %s912_s8 }
 0x199   : > { %527 = vrot.lane.b32.xlu0 %v1154_v46, %s916_s11  ;;  %513 = vrot.lane.b32.xlu1 %v470_v49, %s913_s9 }
 0x19d   : > { %521 = vrot.lane.b32.xlu1 %v470_v49, %s915_s10  ;;  %548 = vperm.xlu0 %896, %v1013_v3  }
 0x1a1   : > { %529 = vrot.lane.b32.xlu1 %v470_v49, %s916_s11 }
 0x1f3   : > { %v480_v51 = vpop.permute.xlu0 %479  ;;  %v472_v52 = vpop.permute.xlu1 %471 }
 0x1f7   : > { %v488_v53 = vpop.permute.xlu0 %487  ;;  %v474_v54 = vpop.permute.xlu1 %473 }
 0x1f8   : > { %v475_v55 = vsel %vm269_vm1, %v472_v52, %v474_v54  ;;  %v476_v56 = vsel %vm269_vm1, %v474_v54, %v472_v52 }
 0x1f9   : > { %v477_v61 = vmul.f32 %v476_v56, %v1038_v14  ;;  %v478_v63 = vmul.f32 %v475_v55, %v1041_v15 }
 0x1fb   : > { %v496_v57 = vpop.permute.xlu0 %495  ;;  %v482_v58 = vpop.permute.xlu1 %481 }
 0x1fc   : > { %v483_v59 = vsel %vm286_vm0, %v480_v51, %v482_v58  ;;  %v484_v60 = vsel %vm286_vm0, %v482_v58, %v480_v51 }
 0x1fd   : > { %v485_v62 = vmul.f32 %v484_v60, %v1035_v13  ;;  %v486_v1 = vmul.f32 %v483_v59, %v1044_v16 }
 0x1ff   : > { %v490_v0 = vpop.permute.xlu1 %489  ;;  %v536_v11 = vpack.c.bf16 %v486_v1, %v478_v63  ;;  %v535_v12 = vpack.c.bf16 %v485_v62, %v477_v61  ;;  %v504_v17 = vpop.permute.xlu0 %503 }
 0x200   : > { %v491_v18 = vsel %vm303_vm2, %v488_v53, %v490_v0  ;;  %v492_v9 = vsel %vm303_vm2, %v490_v0, %v488_v53  ;;  %v866_v0 = vld [vmem:[%s1338_s2 + $0x4] sm:$0xf] }
 0x201   : > { %560 = vmatprep.subr.bf16.mxu1 %v536_v11  ;;  %v493_v23 = vmul.f32 %v492_v9, %v1062_v33  ;;  %v494_v24 = vmul.f32 %v491_v18, %v1066_v35 }
 0x202   : > { %561 = vmatpush1.bf16.msra.mxu1 %v535_v12 }
 0x203   : > { %v498_v10 = vpop.permute.xlu1 %497  ;;  %v512_v27 = vpop.permute.xlu0 %511 }
 0x204   : > { %v499_v19 = vsel %vm320_vm3, %v496_v57, %v498_v10  ;;  %v500_v20 = vsel %vm320_vm3, %v498_v10, %v496_v57 }
 0x205   : > { %v501_v25 = vmul.f32 %v500_v20, %v1070_v36  ;;  %v502_v26 = vmul.f32 %v499_v19, %v1073_v37 }
 0x207   : > { %v506_v28 = vpop.permute.xlu1 %505  ;;  %v538_v29 = vpack.c.bf16 %v502_v26, %v494_v24  ;;  %v537_v30 = vpack.c.bf16 %v501_v25, %v493_v23  ;;  %v520_v42 = vpop.permute.xlu0 %519  ;;  %v918_v24 = vmov 2  }
 0x208   : > { %v507_v31 = vsel %vm337_vm4, %v504_v17, %v506_v28  ;;  %v508_v32 = vsel %vm337_vm4, %v506_v28, %v504_v17  ;;  %897 = vset.pattern.permute.xlu0 %v918_v24 }
 0x209   : > { %v509_v34 = vmul.f32 %v507_v31, %v1085_v44  ;;  %v510_v38 = vmul.f32 %v508_v32, %v1088_v45  ;;  %562 = vmatprep.subr.bf16.mxu1 %v538_v29 }
 0x20a   : > { %563 = vmatpush1.bf16.msra.mxu1 %v537_v30 }
 0x20b   : > { %v514_v39 = vpop.permute.xlu1 %513  ;;  %v540_v40 = vpack.c.bf16 %v510_v38, %v470_v49  ;;  %v539_v41 = vpack.c.bf16 %v509_v34, %v1154_v46  ;;  %v528_v54 = vpop.permute.xlu0 %527 }
 0x20c   : > { %v515_v43 = vsel %vm354_vm5, %v512_v27, %v514_v39  ;;  %v516_v47 = vsel %vm354_vm5, %v514_v39, %v512_v27 }
 0x20d   : > { %564 = vmatprep.subr.bf16.mxu1 %v540_v40  ;;  %v517_v49 = vmul.f32 %v515_v43, %v1106_v4  ;;  %v518_v46 = vmul.f32 %v516_v47, %v1109_v7 }
 0x20e   : > { %565 = vmatpush1.bf16.msra.mxu1 %v539_v41 }
 0x20f   : > { %v522_v48 = vpop.permute.xlu1 %521 }
 0x210   : > { %v523_v50 = vsel %vm371_vm6, %v520_v42, %v522_v48  ;;  %v524_v51 = vsel %vm371_vm6, %v522_v48, %v520_v42 }
 0x211   : > { %v525_v52 = vmul.f32 %v523_v50, %v1113_v5  ;;  %v526_v53 = vmul.f32 %v524_v51, %v1116_v8 }
 0x213   : > { %v530_v55 = vpop.permute.xlu1 %529  ;;  %v542_v56 = vpack.c.bf16 %v526_v53, %v518_v46  ;;  %v541_v57 = vpack.c.bf16 %v525_v52, %v517_v49 }
 0x214   : > { %v531_v58 = vsel %vm388_vm7, %v528_v54, %v530_v55  ;;  %v532_v59 = vsel %vm388_vm7, %v530_v55, %v528_v54 }
 0x215   : > { %v533_v60 = vmul.f32 %v1134_v21, %v531_v58  ;;  %v534_v61 = vmul.f32 %v1139_v22, %v532_v59  ;;  %566 = vmatprep.subr.bf16.mxu1 %v542_v56 }
 0x216   : > { %567 = vmatpush1.bf16.msra.mxu1 %v541_v57 }
 0x217   : > { %v543_v62 = vpack.c.bf16 %v533_v60, %v533_v60  ;;  %v544_v63 = vpack.c.bf16 %v534_v61, %v534_v61 }
 0x219   : > { %867 = vmatprep.subr.msk.bf16.mxu1 %vm421_vm8, %v544_v63  ;;  %v555_v1 = vsel %vm421_vm8, %v543_v62, 0 }
 0x21a   : > { %569 = vmatpush1.bf16.msra.mxu1 %v555_v1 }
 0x21c   : > { %v549_v11 = vpop.permute.xlu0 %548 }
 0x21d   : > { %868 = vmatmul.mubr.msk.bf16.vlgmr.msra.gmra.mrb[0].mxu1 %vm417_vm9, %v866_v0 }
 0x21e   : > { %786 = vmatprep.mubr.bf16.mxu1 %v914_v2 }
 0x2f0   : > { %v594_v12 = vpop.f32.mrb[0].mxu1 }
 0x2f1   : > { %v595_v17 = vadd.f32 %v594_v12, %v549_v11  ;;  %v596_v18 = vpop.f32.mrb[1].mxu1 }
 0x2f2   : > { %v598_v9 = vpop.f32.mrb[2].mxu1  ;;  %v597_v19 = vadd.f32 %v596_v18, %v549_v11 }
 0x2f3   : > { %v1237_v10 = vmax.f32 %v595_v17, 0.0  ;;  %v599_v20 = vpop.f32.mrb[3].mxu1 }
 0x2f4   : > { %v602_v23 = vmax.f32 %v597_v19, 0.0 }
 0x2f5   : > { %611 = vrot.lane.b32.xlu0 %v1237_v10, %s908_s28  ;;  %603 = vrot.lane.b32.xlu1 %v1237_v10, %s909_s29 }
 0x2f9   : > { %619 = vrot.lane.b32.xlu0 %v1237_v10, %s910_s30  ;;  %605 = vrot.lane.b32.xlu1 %v602_v23, %s909_s29 }
 0x2fd   : > { %627 = vrot.lane.b32.xlu0 %v1237_v10, %s911_s7  ;;  %613 = vrot.lane.b32.xlu1 %v602_v23, %s908_s28 }
 0x301   : > { %635 = vrot.lane.b32.xlu0 %v1237_v10, %s912_s8  ;;  %621 = vrot.lane.b32.xlu1 %v602_v23, %s910_s30 }
 0x305   : > { %643 = vrot.lane.b32.xlu0 %v1237_v10, %s913_s9  ;;  %629 = vrot.lane.b32.xlu1 %v602_v23, %s911_s7 }
 0x309   : > { %651 = vrot.lane.b32.xlu0 %v1237_v10, %s915_s10  ;;  %637 = vrot.lane.b32.xlu1 %v602_v23, %s912_s8 }
 0x30d   : > { %659 = vrot.lane.b32.xlu0 %v1237_v10, %s916_s11  ;;  %645 = vrot.lane.b32.xlu1 %v602_v23, %s913_s9 }
 0x311   : > { %653 = vrot.lane.b32.xlu1 %v602_v23, %s915_s10  ;;  %680 = vperm.xlu0 %897, %v1013_v3  }
 0x315   : > { %661 = vrot.lane.b32.xlu1 %v602_v23, %s916_s11  ;;  %899 = vset.pattern.permute.xlu0 %v914_v2 }
 0x319   : > { %741 = vperm.xlu1 %898, %v738_v6  }
 0x367   : > { %v612_v25 = vpop.permute.xlu0 %611  ;;  %v604_v26 = vpop.permute.xlu1 %603 }
 0x36b   : > { %v620_v27 = vpop.permute.xlu0 %619  ;;  %v606_v28 = vpop.permute.xlu1 %605 }
 0x36c   : > { %v607_v29 = vsel %vm269_vm1, %v604_v26, %v606_v28  ;;  %v608_v30 = vsel %vm269_vm1, %v606_v28, %v604_v26 }
 0x36d   : > { %v609_v2 = vmul.f32 %v608_v30, %v1038_v14  ;;  %v610_v38 = vmul.f32 %v607_v29, %v1041_v15 }
 0x36f   : > { %v628_v31 = vpop.permute.xlu0 %627  ;;  %v614_v32 = vpop.permute.xlu1 %613 }
 0x370   : > { %v615_v34 = vsel %vm286_vm0, %v612_v25, %v614_v32  ;;  %v616_v3 = vsel %vm286_vm0, %v614_v32, %v612_v25 }
 0x371   : > { %v617_v39 = vmul.f32 %v616_v3, %v1035_v13  ;;  %v618_v40 = vmul.f32 %v615_v34, %v1044_v16  ;;  %v735_v3 = vld [vmem:[%s1340_s4] sm:$0xf] }
 0x373   : > { %v667_v41 = vpack.c.bf16 %v617_v39, %v609_v2  ;;  %v622_v42 = vpop.permute.xlu1 %621  ;;  %v668_v43 = vpack.c.bf16 %v618_v40, %v610_v38  ;;  %v636_v47 = vpop.permute.xlu0 %635 }
 0x374   : > { %v623_v48 = vsel %vm303_vm2, %v620_v27, %v622_v42  ;;  %v624_v50 = vsel %vm303_vm2, %v622_v42, %v620_v27 }
 0x375   : > { %692 = vmatprep.subr.bf16.mxu0 %v668_v43  ;;  %v625_v15 = vmul.f32 %v624_v50, %v1062_v33  ;;  %v626_v16 = vmul.f32 %v623_v48, %v1066_v35 }
 0x376   : > { %693 = vmatpush1.bf16.msra.mxu0 %v667_v41 }
 0x377   : > { %v630_v51 = vpop.permute.xlu1 %629  ;;  %v644_v52 = vpop.permute.xlu0 %643 }
 0x378   : > { %v631_v14 = vsel %vm320_vm3, %v628_v31, %v630_v51  ;;  %v632_v13 = vsel %vm320_vm3, %v630_v51, %v628_v31 }
 0x379   : > { %v633_v49 = vmul.f32 %v632_v13, %v1070_v36  ;;  %v634_v46 = vmul.f32 %v631_v14, %v1073_v37 }
 0x37b   : > { %v669_v53 = vpack.c.bf16 %v633_v49, %v625_v15  ;;  %v638_v54 = vpop.permute.xlu1 %637  ;;  %v670_v55 = vpack.c.bf16 %v634_v46, %v626_v16  ;;  %v652_v59 = vpop.permute.xlu0 %651 }
 0x37c   : > { %v639_v56 = vsel %vm337_vm4, %v636_v47, %v638_v54  ;;  %v640_v57 = vsel %vm337_vm4, %v638_v54, %v636_v47 }
 0x37d   : > { %v641_v58 = vmul.f32 %v639_v56, %v1085_v44  ;;  %v642_v33 = vmul.f32 %v640_v57, %v1088_v45  ;;  %694 = vmatprep.subr.bf16.mxu0 %v670_v55 }
 0x37e   : > { %695 = vmatpush1.bf16.msra.mxu0 %v669_v53 }
 0x37f   : > { %v671_v35 = vpack.c.bf16 %v641_v58, %v1237_v10  ;;  %v646_v36 = vpop.permute.xlu1 %645  ;;  %v672_v37 = vpack.c.bf16 %v642_v33, %v602_v23  ;;  %v660_v12 = vpop.permute.xlu0 %659  ;;  %v869_v23 = vld [vmem:[%s1338_s2 + $0x8] sm:$0xf] }
 0x380   : > { %v647_v60 = vsel %vm354_vm5, %v644_v52, %v646_v36  ;;  %v648_v61 = vsel %vm354_vm5, %v646_v36, %v644_v52 }
 0x381   : > { %696 = vmatprep.subr.bf16.mxu0 %v672_v37  ;;  %v649_v63 = vmul.f32 %v647_v60, %v1106_v4  ;;  %v650_v1 = vmul.f32 %v648_v61, %v1109_v7 }
 0x382   : > { %697 = vmatpush1.bf16.msra.mxu0 %v671_v35 }
 0x383   : > { %v654_v62 = vpop.permute.xlu1 %653 }
 0x384   : > { %v655_v44 = vsel %vm371_vm6, %v652_v59, %v654_v62  ;;  %v656_v45 = vsel %vm371_vm6, %v654_v62, %v652_v59 }
 0x385   : > { %v657_v0 = vmul.f32 %v655_v44, %v1113_v5  ;;  %v658_v11 = vmul.f32 %v656_v45, %v1116_v8 }
 0x387   : > { %v673_v17 = vpack.c.bf16 %v657_v0, %v649_v63  ;;  %v662_v18 = vpop.permute.xlu1 %661  ;;  %v674_v9 = vpack.c.bf16 %v658_v11, %v650_v1 }
 0x388   : > { %v663_v10 = vsel %vm388_vm7, %v660_v12, %v662_v18  ;;  %v664_v19 = vsel %vm388_vm7, %v662_v18, %v660_v12 }
 0x389   : > { %v665_v20 = vmul.f32 %v1134_v21, %v663_v10  ;;  %v666_v4 = vmul.f32 %v1139_v22, %v664_v19  ;;  %698 = vmatprep.subr.bf16.mxu0 %v674_v9 }
 0x38a   : > { %699 = vmatpush1.bf16.msra.mxu0 %v673_v17 }
 0x38b   : > { %v675_v7 = vpack.c.bf16 %v665_v20, %v665_v20  ;;  %v676_v5 = vpack.c.bf16 %v666_v4, %v666_v4 }
 0x38d   : > { %870 = vmatprep.subr.msk.bf16.mxu0 %vm421_vm8, %v676_v5  ;;  %v687_v8 = vsel %vm421_vm8, %v675_v7, 0 }
 0x38e   : > { %701 = vmatpush1.bf16.msra.mxu0 %v687_v8 }
 0x390   : > { %v681_v21 = vpop.permute.xlu0 %680 }
 0x391   : > { %871 = vmatmul.mubr.msk.bf16.vlgmr.msra.gmra.mrb[4].mxu0 %vm417_vm9, %v869_v23 }
 0x398   : > { %v742_v2 = vpop.permute.xlu1 %741 }
 0x464   : > { %v726_v22 = vpop.f32.mrb[4].mxu0 }
 0x465   : > { %v727_v24 = vadd.f32 %v726_v22, %v681_v21  ;;  %v728_v25 = vpop.f32.mrb[5].mxu0 }
 0x466   : > { %v729_v26 = vadd.f32 %v728_v25, %v681_v21  ;;  %v730_v27 = vpop.f32.mrb[6].mxu0 }
 0x467   : > { %v733_v28 = vmax.f32 %v727_v24, 0.0  ;;  %v731_v29 = vpop.f32.mrb[7].mxu0 }
 0x468   : > { %v734_v30 = vmax.f32 %v729_v26, 0.0 }
 0x469   : > { %v736_v31 = vpack.c.bf16 %v733_v28, %v733_v28 }
 0x46a   : > { %v737_v32 = vpack.c.bf16 %v734_v30, %v734_v30 }
 0x46b   : > { %v749_v34 = vsel %vm421_vm8, %v736_v31, 0 }
 0x46c   : > { %872 = vmatprep.subr.msk.bf16.mxu1 %vm421_vm8, %v737_v32 }
 0x46d   : > { %755 = vmatpush1.bf16.msra.mxu1 %v749_v34 }
 0x470   : > { %873 = vmatmul.mubr.msk.bf16.vlgmr.msra.gmra.mrb[4].mxu1 %vm744_vm10, %v735_v3 }
 0x543   : > { %v788_v38 = vpop.f32.mrb[4].mxu1 }
 0x544   : > { %v790_v39 = vpop.f32.mrb[5].mxu1  ;;  %v789_v40 = vadd.f32 %v788_v38, %v742_v2 }
 0x545   : > { %v792_v41 = vpop.f32.mrb[6].mxu1  ;;  %v791_v42 = vadd.f32 %v790_v39, %v742_v2 }
 0x546   : > { %795 = vst [vmem:[%s253_s13] sm:$0xff] %v789_v40  ;;  %v793_v43 = vpop.f32.mrb[7].mxu1 }
 0x547   : > { %796 = vst [vmem:[%s253_s13 + $0x8] sm:$0xff] %v791_v42 }
 0x548 PF: > { %s16_s21 = sadd.s32 1, %s906_s21  }
 0x549   : > { %p13_p4 = scmp.ge.s32.totalorder %s16_s21, 4  }
 0x54b   :  { %15 = sbr.rel (!%p13_p4) target bundleno = 1 (0x1), region = 76 }

// kernel: separable_encoder.3
= control target key start
LH: loop header
LB: loop body
LE: loop exit
PB: predicated region body
PF: predicated region fallthrough
CT: control target
= control target key end

     0   :  { %v477_v1 = vmov 0.0   ;;  %s478_s23 = smov 7   ;;  %s479_s24 = smov 9   ;;  %vm486_vm0 = vmmov 0   ;;  %v487_v2 = vmov 0   ;;  %v30_v4 = vlaneseq  ;;  %s675_s0 = inlined_call_operand.vmem [shape: f32[8,128], index: 0, kind: input, shape index: {}]   ;;  %s676_s3 = inlined_call_operand.vmem [shape: f32[8,3], index: 3, kind: input, shape index: {}]   ;;  %s677_s1 = inlined_call_operand.vmem [shape: f32[9,128], index: 1, kind: input, shape index: {}]   ;;  %s678_s2 = inlined_call_operand.vmem [shape: bf16[3,8,72], index: 2, kind: input, shape index: {}]   ;;  %s679_s4 = inlined_call_operand.vmem [shape: bf16[16,8], index: 4, kind: input, shape index: {}]   ;;  %s680_s5 = inlined_call_operand.vmem [shape: f32[16,1], index: 5, kind: input, shape index: {}]   ;;  %s681_s6 = inlined_call_operand.vmem [shape: f32[16,128], index: 6, kind: output, shape index: {}]  }
   0x1   :  { %v528_v0 = vld [vmem:[%s675_s0] sm:$0xff]  ;;  %410 = vmatprep.subr.bf16.mxu0 %v477_v1  ;;  %424 = vmatprep.subr.bf16.mxu1 %v477_v1  ;;  %s480_s25 = smov 1   ;;  %s481_s26 = smov 8   ;;  %v586_v34 = vld [vmem:[%s677_s1 + $0x8] ss:$0 sm:$0xff]  ;;  %vm99_vm1 = vcmask 1043456  }
   0x2   :  { %42 = vrot.lane.b32.xlu1 %v528_v0, %s478_s23  ;;  %28 = vrot.lane.b32.xlu0 %v528_v0, %s479_s24  ;;  %s482_s0 = smov 127   ;;  %s483_s27 = smov 121   ;;  %v556_v3 = vld [vmem:[%s676_s3] sm:$0xff]  ;;  %v31_v5 = vshrl.u32 %v30_v4, 7  ;;  %vm95_vm2 = vcmask 588800   ;;  %v488_v52 = vmov 1  }
   0x3   :  { %s484_s28 = smov 120   ;;  %s485_s29 = smov 119   ;;  %420 = vmatprep.mubr.msk.bf16.mxu0 %vm486_vm0, %v477_v1  ;;  %434 = vmatprep.mubr.msk.bf16.mxu1 %vm486_vm0, %v477_v1  ;;  %v25_v8 = vld [vmem:[%s677_s1] sm:$0xff]  ;;  %vm328_vm3 = vcmask 64512  }
   0x4   :  { %471 = vset.pattern.permute.xlu0 %v487_v2  ;;  %474 = vset.pattern.permute.xlu1 %v487_v2  ;;  %v32_v6 = vsub.s32 0, %v31_v5  ;;  %v39_v7 = vsub.s32 1, %v31_v5  ;;  %v46_v9 = vsub.s32 2, %v31_v5  ;;  %v53_v10 = vsub.s32 3, %v31_v5  ;;  %v89_v44 = vld [vmem:[%s678_s2] sm:$0xf] }
   0x5   :  { %v60_v15 = vsub.s32 5, %v31_v5  ;;  %v67_v20 = vsub.s32 6, %v31_v5  ;;  %v74_v24 = vsub.s32 7, %v31_v5 }
   0x6   :  { %49 = vrot.lane.b32.xlu1 %v528_v0, %s480_s25  ;;  %35 = vrot.lane.b32.xlu0 %v528_v0, %s481_s26  ;;  %v563_v13 = vrot.slane %v25_v8, %v32_v6  ;;  %v565_v14 = vrot.slane %v25_v8, %v39_v7  ;;  %v567_v16 = vrot.slane %v25_v8, %v46_v9 }
   0x7   :  { %v569_v17 = vrot.slane %v25_v8, %v53_v10  ;;  %v573_v23 = vrot.slane %v25_v8, %v60_v15  ;;  %v578_v31 = vrot.slane %v25_v8, %v67_v20  ;;  %v580_v32 = vrot.slane %v25_v8, %v74_v24 }
   0xa   :  { %56 = vrot.lane.b32.xlu0 %v528_v0, %s482_s0  ;;  %63 = vrot.lane.b32.xlu1 %v528_v0, %s483_s27 }
   0xe   :  { %70 = vrot.lane.b32.xlu0 %v528_v0, %s484_s28  ;;  %77 = vrot.lane.b32.xlu1 %v528_v0, %s485_s29 }
  0x12   :  { %92 = vperm.xlu0 %471, %v556_v3  }
  0x16   :  { %472 = vset.pattern.permute.xlu0 %v488_v52 }
  0x74   :  { %v43_v11 = vpop.permute.xlu1 %42  ;;  %v29_v12 = vpop.permute.xlu0 %28 }
  0x75   :  { %v34_v21 = vmul.f32 %v563_v13, %v29_v12  ;;  %v48_v25 = vmul.f32 %v567_v16, %v43_v11 }
  0x78   :  { %v50_v18 = vpop.permute.xlu1 %49  ;;  %v36_v19 = vpop.permute.xlu0 %35 }
  0x79   :  { %v41_v22 = vmul.f32 %v565_v14, %v36_v19  ;;  %v55_v26 = vmul.f32 %v569_v17, %v50_v18  ;;  %v384_v18 = vld [vmem:[%s678_s2 + $0x4] sm:$0xf] }
  0x7b   :  { %v84_v27 = vpack.c.bf16 %v41_v22, %v34_v21  ;;  %v85_v33 = vpack.c.bf16 %v55_v26, %v48_v25 }
  0x7c   :  { %v57_v28 = vpop.permute.xlu0 %56  ;;  %v64_v29 = vpop.permute.xlu1 %63 }
  0x7d   :  { %411 = vmatpush3.bf16.msra.mxu0 %v84_v27  ;;  %v62_v30 = vmul.f32 %v573_v23, %v57_v28  ;;  %v69_v38 = vmul.f32 %v578_v31, %v64_v29  ;;  %v489_v27 = vmov 2  }
  0x7e   :  { %412 = vmatprep.subr.bf16.mxu0 %v477_v1 }
  0x7f   :  { %v86_v37 = vpack.c.bf16 %v62_v30, %v528_v0 }
  0x80   :  { %v71_v35 = vpop.permute.xlu0 %70  ;;  %v78_v36 = vpop.permute.xlu1 %77 }
  0x81   :  { %413 = vmatpush3.bf16.msra.mxu0 %v85_v33  ;;  %v76_v39 = vmul.f32 %v580_v32, %v71_v35  ;;  %v83_v40 = vmul.f32 %v586_v34, %v78_v36 }
  0x82   :  { %414 = vmatprep.subr.bf16.mxu0 %v477_v1 }
  0x83   :  { %v87_v41 = vpack.c.bf16 %v76_v39, %v69_v38  ;;  %v88_v42 = vpack.c.bf16 %v83_v40, %v83_v40 }
  0x85   :  { %415 = vmatpush3.bf16.msra.mxu0 %v86_v37  ;;  %v101_v43 = vsel %vm99_vm1, %v88_v42, 0 }
  0x86   :  { %416 = vmatprep.subr.bf16.mxu0 %v477_v1 }
  0x89   :  { %417 = vmatpush3.bf16.msra.mxu0 %v87_v41 }
  0x8a   :  { %418 = vmatprep.subr.bf16.mxu0 %v477_v1 }
  0x8d   :  { %419 = vmatpush3.bf16.msra.mxu0 %v101_v43 }
  0x8e   :  { %438 = vmatprep.subr.bf16.mxu0 %v477_v1 }
  0x90   :  { %421 = vmatmul.mubr.msk.bf16.vlgmr.msra.gmra.mrb[0].mxu0 %vm95_vm2, %v89_v44 }
  0x91   :  { %448 = vmatprep.mubr.msk.bf16.mxu0 %vm486_vm0, %v477_v1  ;;  %v93_v45 = vpop.permute.xlu0 %92 }
 0x163   :  { %v137_v46 = vpop.f32.mrb[0].mxu0 }
 0x164   :  { %v138_v47 = vadd.f32 %v137_v46, %v93_v45  ;;  %v422_v48 = vpop.f32.mrb[1].mxu0 }
 0x165   :  { %v140_v49 = vpop.f32.mrb[2].mxu0 }
 0x166   :  { %v143_v50 = vmax.f32 %v138_v47, 0.0  ;;  %v423_v51 = vpop.f32.mrb[3].mxu0 }
 0x168   :  { %150 = vrot.lane.b32.xlu0 %v143_v50, %s478_s23  ;;  %144 = vrot.lane.b32.xlu1 %v143_v50, %s479_s24 }
 0x16c   :  { %156 = vrot.lane.b32.xlu0 %v143_v50, %s482_s0  ;;  %147 = vrot.lane.b32.xlu1 %v143_v50, %s481_s26 }
 0x170   :  { %162 = vrot.lane.b32.xlu0 %v143_v50, %s484_s28  ;;  %153 = vrot.lane.b32.xlu1 %v143_v50, %s480_s25 }
 0x174   :  { %159 = vrot.lane.b32.xlu1 %v143_v50, %s483_s27  ;;  %176 = vperm.xlu0 %472, %v556_v3  }
 0x178   :  { %165 = vrot.lane.b32.xlu1 %v143_v50, %s485_s29  ;;  %473 = vset.pattern.permute.xlu0 %v489_v27 }
 0x1da   :  { %v145_v53 = vpop.permute.xlu1 %144  ;;  %v151_v54 = vpop.permute.xlu0 %150 }
 0x1db   :  { %v146_v56 = vmul.f32 %v145_v53, %v563_v13  ;;  %v152_v61 = vmul.f32 %v151_v54, %v567_v16  ;;  %v476_v54 = vld [vmem:[%s679_s4] sm:$0xff]  }
 0x1de   :  { %v148_v55 = vpop.permute.xlu1 %147  ;;  %v157_v59 = vpop.permute.xlu0 %156 }
 0x1df   :  { %v149_v57 = vmul.f32 %v148_v55, %v565_v14  ;;  %v158_v63 = vmul.f32 %v157_v59, %v573_v23 }
 0x1e1   :  { %v168_v58 = vpack.c.bf16 %v149_v57, %v146_v56  ;;  %v170_v6 = vpack.c.bf16 %v158_v63, %v143_v50 }
 0x1e2   :  { %v154_v60 = vpop.permute.xlu1 %153  ;;  %v163_v5 = vpop.permute.xlu0 %162 }
 0x1e3   :  { %v155_v62 = vmul.f32 %v154_v60, %v569_v17  ;;  %425 = vmatpush3.bf16.msra.mxu1 %v168_v58  ;;  %v164_v9 = vmul.f32 %v163_v5, %v580_v32 }
 0x1e4   :  { %426 = vmatprep.subr.bf16.mxu1 %v477_v1 }
 0x1e5   :  { %v169_v0 = vpack.c.bf16 %v155_v62, %v152_v61 }
 0x1e6   :  { %v160_v4 = vpop.permute.xlu1 %159 }
 0x1e7   :  { %427 = vmatpush3.bf16.msra.mxu1 %v169_v0  ;;  %v161_v7 = vmul.f32 %v160_v4, %v578_v31 }
 0x1e8   :  { %428 = vmatprep.subr.bf16.mxu1 %v477_v1 }
 0x1e9   :  { %v171_v11 = vpack.c.bf16 %v164_v9, %v161_v7 }
 0x1ea   :  { %v166_v8 = vpop.permute.xlu1 %165 }
 0x1eb   :  { %v167_v10 = vmul.f32 %v586_v34, %v166_v8  ;;  %429 = vmatpush3.bf16.msra.mxu1 %v170_v6 }
 0x1ec   :  { %430 = vmatprep.subr.bf16.mxu1 %v477_v1 }
 0x1ed   :  { %v172_v12 = vpack.c.bf16 %v167_v10, %v167_v10 }
 0x1ef   :  { %431 = vmatpush3.bf16.msra.mxu1 %v171_v11  ;;  %v183_v15 = vsel %vm99_vm1, %v172_v12, 0 }
 0x1f0   :  { %432 = vmatprep.subr.bf16.mxu1 %v477_v1 }
 0x1f3   :  { %433 = vmatpush3.bf16.msra.mxu1 %v183_v15  ;;  %v177_v19 = vpop.permute.xlu0 %176 }
 0x1f4   :  { %452 = vmatprep.subr.bf16.mxu1 %v477_v1 }
 0x1f6   :  { %435 = vmatmul.mubr.msk.bf16.vlgmr.msra.gmra.mrb[0].mxu1 %vm95_vm2, %v384_v18 }
 0x1f7   :  { %454 = vmatprep.mubr.msk.bf16.mxu1 %vm486_vm0, %v477_v1 }
 0x2c9   :  { %v219_v20 = vpop.f32.mrb[0].mxu1 }
 0x2ca   :  { %v220_v21 = vadd.f32 %v219_v20, %v177_v19  ;;  %v436_v22 = vpop.f32.mrb[1].mxu1 }
 0x2cb   :  { %v222_v24 = vpop.f32.mrb[2].mxu1 }
 0x2cc   :  { %v225_v25 = vmax.f32 %v220_v21, 0.0  ;;  %v437_v26 = vpop.f32.mrb[3].mxu1 }
 0x2ce   :  { %232 = vrot.lane.b32.xlu0 %v225_v25, %s478_s23  ;;  %226 = vrot.lane.b32.xlu1 %v225_v25, %s479_s24 }
 0x2d2   :  { %238 = vrot.lane.b32.xlu0 %v225_v25, %s482_s0  ;;  %229 = vrot.lane.b32.xlu1 %v225_v25, %s481_s26 }
 0x2d6   :  { %244 = vrot.lane.b32.xlu0 %v225_v25, %s484_s28  ;;  %235 = vrot.lane.b32.xlu1 %v225_v25, %s480_s25 }
 0x2da   :  { %241 = vrot.lane.b32.xlu1 %v225_v25, %s483_s27  ;;  %258 = vperm.xlu0 %473, %v556_v3  }
 0x2de   :  { %247 = vrot.lane.b32.xlu1 %v225_v25, %s485_s29  ;;  %475 = vset.pattern.permute.xlu0 %v487_v2 }
 0x340   :  { %v227_v28 = vpop.permute.xlu1 %226  ;;  %v233_v29 = vpop.permute.xlu0 %232 }
 0x341   :  { %v228_v33 = vmul.f32 %v227_v28, %v563_v13  ;;  %v234_v39 = vmul.f32 %v233_v29, %v567_v16 }
 0x344   :  { %v230_v30 = vpop.permute.xlu1 %229  ;;  %v239_v37 = vpop.permute.xlu0 %238 }
 0x345   :  { %v231_v35 = vmul.f32 %v230_v30, %v565_v14  ;;  %v240_v3 = vmul.f32 %v239_v37, %v573_v23 }
 0x347   :  { %v250_v36 = vpack.c.bf16 %v231_v35, %v228_v33  ;;  %v252_v13 = vpack.c.bf16 %v240_v3, %v225_v25 }
 0x348   :  { %v236_v38 = vpop.permute.xlu1 %235  ;;  %v245_v42 = vpop.permute.xlu0 %244 }
 0x349   :  { %v237_v40 = vmul.f32 %v236_v38, %v569_v17  ;;  %439 = vmatpush3.bf16.msra.mxu0 %v250_v36  ;;  %v246_v44 = vmul.f32 %v245_v42, %v580_v32  ;;  %v311_v32 = vld [vmem:[%s680_s5] sm:$0xff] }
 0x34a   :  { %440 = vmatprep.subr.bf16.mxu0 %v477_v1  ;;  %315 = vperm.xlu1 %474, %v311_v32  }
 0x34b   :  { %v251_v2 = vpack.c.bf16 %v237_v40, %v234_v39 }
 0x34c   :  { %v242_v41 = vpop.permute.xlu1 %241 }
 0x34d   :  { %441 = vmatpush3.bf16.msra.mxu0 %v251_v2  ;;  %v243_v14 = vmul.f32 %v242_v41, %v578_v31  ;;  %v386_v31 = vld [vmem:[%s678_s2 + $0x8] sm:$0xf] }
 0x34e   :  { %442 = vmatprep.subr.bf16.mxu0 %v477_v1 }
 0x34f   :  { %v253_v17 = vpack.c.bf16 %v246_v44, %v243_v14 }
 0x350   :  { %v248_v43 = vpop.permute.xlu1 %247 }
 0x351   :  { %v249_v16 = vmul.f32 %v586_v34, %v248_v43  ;;  %443 = vmatpush3.bf16.msra.mxu0 %v252_v13  ;;  %v312_v34 = vld [vmem:[%s680_s5 + $0x8] sm:$0xff] }
 0x352   :  { %444 = vmatprep.subr.bf16.mxu0 %v477_v1  ;;  %320 = vperm.xlu1 %474, %v312_v34  }
 0x353   :  { %v254_v45 = vpack.c.bf16 %v249_v16, %v249_v16 }
 0x355   :  { %445 = vmatpush3.bf16.msra.mxu0 %v253_v17  ;;  %v265_v23 = vsel %vm99_vm1, %v254_v45, 0 }
 0x356   :  { %446 = vmatprep.subr.bf16.mxu0 %v477_v1 }
 0x359   :  { %447 = vmatpush3.bf16.msra.mxu0 %v265_v23  ;;  %v259_v1 = vpop.permute.xlu0 %258 }
 0x35c   :  { %449 = vmatmul.mubr.msk.bf16.vlgmr.msra.gmra.mrb[4].mxu0 %vm95_vm2, %v386_v31 }
 0x3c9   :  { %v316_v55 = vpop.permute.xlu1 %315 }
 0x3d1   :  { %v321_v59 = vpop.permute.xlu1 %320 }
 0x42f   :  { %v301_v46 = vpop.f32.mrb[4].mxu0 }
 0x430   :  { %v302_v47 = vadd.f32 %v301_v46, %v259_v1  ;;  %v450_v48 = vpop.f32.mrb[5].mxu0 }
 0x431   :  { %v304_v49 = vpop.f32.mrb[6].mxu0 }
 0x432   :  { %v307_v50 = vmax.f32 %v302_v47, 0.0  ;;  %v451_v51 = vpop.f32.mrb[7].mxu0 }
 0x434   :  { %v310_v52 = vpack.c.bf16 %v307_v50, %v307_v50 }
 0x436   :  { %v333_v53 = vsel %vm99_vm1, %v310_v52, 0 }
 0x437   :  { %453 = vmatpush3.bf16.msra.mxu1 %v333_v53 }
 0x43a   :  { %455 = vmatmul.mubr.msk.bf16.vlgmr.msra.gmra.mrb[4].mxu1 %vm328_vm3, %v476_v54 }
 0x50d   :  { %v369_v56 = vpop.f32.mrb[4].mxu1 }
 0x50e   :  { %v370_v57 = vadd.f32 %v369_v56, %v316_v55  ;;  %v456_v58 = vpop.f32.mrb[5].mxu1 }
 0x50f   :  { %v372_v60 = vpop.f32.mrb[6].mxu1 }
 0x510   :  { %376 = vst [vmem:[%s681_s6] sm:$0xff] %v370_v57  ;;  %v373_v61 = vadd.f32 %v372_v60, %v321_v59  ;;  %v457_v62 = vpop.f32.mrb[7].mxu1 }
 0x512   :  { %377 = vst [vmem:[%s681_s6 + $0x8] sm:$0xff] %v373_v61 }

</bundles_post_ra>
